<compile_context>
chip_gen: v6e
topology: v6e:2x2x1
jax: 0.10.0
libtpu: 0.0.40
codegen_flags: <defaults>
</compile_context>

<pallas_src>
import functools
import math

import jax
import jax.numpy as jnp
from jax import lax
from jax.experimental import pallas as pl
from jax.experimental.pallas import tpu as pltpu


def _attention_block_kernel(
    x_ref,        # (M, E)   full slab, M = P*B*S
    ln1g_ref,     # (1, E)
    ln1b_ref,     # (1, E)
    wq_ref,       # (E, E)   in_proj Q weight^T
    wk_ref,       # (E, E)   in_proj K weight^T
    wv_ref,       # (E, E)   in_proj V weight^T
    bq_ref,       # (1, E)
    bk_ref,       # (1, E)
    bv_ref,       # (1, E)
    wo_ref,       # (E, E)   out_proj.weight^T
    bo_ref,       # (1, E)   out_proj.bias
    ln2g_ref,     # (M, E)   per-modality LN2 gamma, pre-broadcast per row
    ln2b_ref,     # (M, E)
    w1_ref,       # (E, H)   conv1x1 E->H (weight^T), no bias
    w2_ref,       # (H, E)   conv1x1 H->E (weight^T), no bias
    neg_ref,      # (M, M)   additive block-diagonal mask (0 same group, -1e30 else)
    hmask_ref,    # (num_heads, E)  per-head {0,1} lane mask
    o_ref,        # (M, E)
    *,
    num_heads: int,
    head_dim: int,
):
    x = x_ref[...]                                  # (M, E) f32
    scale = 1.0 / math.sqrt(head_dim)
    eps = 1e-5

    # ---- LayerNorm 1 (shared params) ----
    mu = jnp.mean(x, axis=-1, keepdims=True)
    xc = x - mu
    var = jnp.mean(xc * xc, axis=-1, keepdims=True)
    h = xc * lax.rsqrt(var + eps) * ln1g_ref[...] + ln1b_ref[...]       # (M, E)

    # ---- Q/K/V projections (full-width matmuls, no lane slices) ----
    q = jnp.dot(h, wq_ref[...], preferred_element_type=jnp.float32) + bq_ref[...]
    k = jnp.dot(h, wk_ref[...], preferred_element_type=jnp.float32) + bk_ref[...]
    v = jnp.dot(h, wv_ref[...], preferred_element_type=jnp.float32) + bv_ref[...]
    q = q * scale

    neg = neg_ref[...]                               # (M, M)
    hmask = hmask_ref[...]                           # (num_heads, E)

    # ---- Multi-head self-attention via per-head lane masks ----
    # (q*mask_h) @ k^T contracts over full E but equals the head-h score
    # (non-head lanes of q are zero); sum_h p_h @ (v*mask_h) reassembles the
    # head-concatenated context with no slices / concat / relayout.
    ctx = jnp.zeros_like(q)                          # (M, E)
    for hh in range(num_heads):                      # static unroll, small num_heads
        hm = hmask[hh:hh + 1, :]                     # (1, E)
        qm = q * hm                                  # (M, E)
        s = lax.dot_general(qm, k, (((1,), (1,)), ((), ())),
                            preferred_element_type=jnp.float32) + neg    # (M, M)
        s = s - jnp.max(s, axis=-1, keepdims=True)
        p = jnp.exp(s)
        p = p * pl.reciprocal(jnp.sum(p, axis=-1, keepdims=True), approx=True)
        ctx = ctx + jnp.dot(p, v * hm, preferred_element_type=jnp.float32)

    attn = jnp.dot(ctx, wo_ref[...], preferred_element_type=jnp.float32) + bo_ref[...]
    x1 = x + attn                                    # residual 1

    # ---- LayerNorm 2 (per-modality params, pre-broadcast per row) ----
    mu2 = jnp.mean(x1, axis=-1, keepdims=True)
    xc2 = x1 - mu2
    var2 = jnp.mean(xc2 * xc2, axis=-1, keepdims=True)
    g = xc2 * lax.rsqrt(var2 + eps) * ln2g_ref[...] + ln2b_ref[...]     # (M, E)

    # ---- MLP: conv1x1(E->H) -> GELU (tanh approx, EUP) -> conv1x1(H->E) ----
    m = jnp.dot(g, w1_ref[...], preferred_element_type=jnp.float32)     # (M, H)
    m = jax.nn.gelu(m, approximate=True)
    y = jnp.dot(m, w2_ref[...], preferred_element_type=jnp.float32)     # (M, E)

    o_ref[...] = x1 + y                              # residual 2


def attention_block_pallas(x, params, *, num_heads):
    """x: (P, B, S, E) float32.  params: dict of kernel-layout weights."""
    P, B, S, E = x.shape
    H = params["w1_t"].shape[-1]
    M = P * B * S
    Dh = E // num_heads

    # Free HBM reshape: flatten (P, B, S) so the kernel sees one (M, E) slab.
    x2 = x.reshape(M, E)

    # Block-diagonal additive mask: token i attends only to tokens of the same
    # (modality, batch) group (group size S over P*B groups).
    gid = jnp.arange(M, dtype=jnp.int32) // S
    neg = jnp.where(gid[:, None] == gid[None, :], 0.0, -1e30).astype(jnp.float32)

    # Per-head {0,1} lane masks over the embed dim.
    lane_head = jnp.arange(E, dtype=jnp.int32) // Dh
    hmask = (lane_head[None, :] ==
             jnp.arange(num_heads, dtype=jnp.int32)[:, None]).astype(jnp.float32)

    # Per-modality LN2 params pre-broadcast to one row per token (matches the
    # p-major, b, s flatten order of x2).
    ln2g_bc = jnp.repeat(params["ln2_g"], B * S, axis=0)   # (M, E)
    ln2b_bc = jnp.repeat(params["ln2_b"], B * S, axis=0)   # (M, E)

    # Split fused in_proj into Q/K/V weights + biases (cheap wrapper slices).
    win_t, b_in = params["win_t"], params["b_in"]
    wq_t, wk_t, wv_t = win_t[:, :E], win_t[:, E:2 * E], win_t[:, 2 * E:]
    bq, bk, bv = b_in[:, :E], b_in[:, E:2 * E], b_in[:, 2 * E:]

    kern = functools.partial(_attention_block_kernel,
                             num_heads=num_heads, head_dim=Dh)

    flops = (
        3 * 2 * M * E * E                     # Q/K/V projections
        + num_heads * (2 * M * M * E          # scores (full-E contraction)
                       + 2 * M * M * E)       # context
        + 2 * M * E * E                       # out projection
        + 4 * M * E * H                       # MLP up + down
    )
    transcendentals = num_heads * M * M + M * H          # exp + tanh
    bytes_accessed = 4 * (
        2 * M * E                             # x in + out
        + M * M                               # mask
        + 2 * M * E                           # ln2 broadcast params
        + num_heads * E                       # head masks
        + 3 * (E * E + E)                     # qkv weights + biases
        + E * E + E                           # out proj
        + 2 * E                               # ln1
        + 2 * E * H                           # mlp weights
    )

    grid_spec = pltpu.PrefetchScalarGridSpec(
        num_scalar_prefetch=0,
        grid=(1,),                                            # single invocation
        in_specs=[
            pl.BlockSpec((M, E), lambda i: (0, 0)),           # x slab
            pl.BlockSpec((1, E), lambda i: (0, 0)),           # ln1 gamma
            pl.BlockSpec((1, E), lambda i: (0, 0)),           # ln1 beta
            pl.BlockSpec((E, E), lambda i: (0, 0)),           # wq^T
            pl.BlockSpec((E, E), lambda i: (0, 0)),           # wk^T
            pl.BlockSpec((E, E), lambda i: (0, 0)),           # wv^T
            pl.BlockSpec((1, E), lambda i: (0, 0)),           # bq
            pl.BlockSpec((1, E), lambda i: (0, 0)),           # bk
            pl.BlockSpec((1, E), lambda i: (0, 0)),           # bv
            pl.BlockSpec((E, E), lambda i: (0, 0)),           # out_proj w^T
            pl.BlockSpec((1, E), lambda i: (0, 0)),           # out_proj b
            pl.BlockSpec((M, E), lambda i: (0, 0)),           # ln2 gamma (broadcast)
            pl.BlockSpec((M, E), lambda i: (0, 0)),           # ln2 beta (broadcast)
            pl.BlockSpec((E, H), lambda i: (0, 0)),           # mlp w1^T
            pl.BlockSpec((H, E), lambda i: (0, 0)),           # mlp w2^T
            pl.BlockSpec((M, M), lambda i: (0, 0)),           # block-diag mask
            pl.BlockSpec((num_heads, E), lambda i: (0, 0)),   # per-head lane masks
        ],
        out_specs=pl.BlockSpec((M, E), lambda i: (0, 0)),
    )

    out2 = pl.pallas_call(
        kern,
        out_shape=jax.ShapeDtypeStruct((M, E), jnp.float32),
        grid_spec=grid_spec,
        compiler_params=pltpu.CompilerParams(
            dimension_semantics=("arbitrary",)),
        cost_estimate=pl.CostEstimate(
            flops=flops,
            transcendentals=transcendentals,
            bytes_accessed=bytes_accessed),
    )(
        x2,
        params["ln1_g"], params["ln1_b"],
        wq_t, wk_t, wv_t, bq, bk, bv,
        params["wo_t"], params["b_out"],
        ln2g_bc, ln2b_bc,
        params["w1_t"], params["w2_t"],
        neg, hmask,
    )
    return out2.reshape(P, B, S, E)


def attention_block_reference(x, params, *, num_heads):
    """Pure-JAX f32 reference (mirrors the PyTorch forward; exact erf GELU)."""
    P, B, S, E = x.shape
    Dh = E // num_heads
    hp = jax.lax.Precision.HIGHEST
    eps = 1e-5

    def ln(t, g, b):
        mu = t.mean(-1, keepdims=True)
        var = ((t - mu) ** 2).mean(-1, keepdims=True)
        return (t - mu) / jnp.sqrt(var + eps) * g + b

    h = ln(x, params["ln1_g"][0], params["ln1_b"][0])
    qkv = jnp.einsum("pbse,ef->pbsf", h, params["win_t"], precision=hp) + params["b_in"][0]
    q, k, v = jnp.split(qkv, 3, axis=-1)
    q = q.reshape(P, B, S, num_heads, Dh) * (1.0 / math.sqrt(Dh))
    k = k.reshape(P, B, S, num_heads, Dh)
    v = v.reshape(P, B, S, num_heads, Dh)
    s = jnp.einsum("pbqhd,pbkhd->pbhqk", q, k, precision=hp)
    a = jax.nn.softmax(s, axis=-1)
    o = jnp.einsum("pbhqk,pbkhd->pbqhd", a, v, precision=hp).reshape(P, B, S, E)
    attn = jnp.einsum("pbse,ef->pbsf", o, params["wo_t"], precision=hp) + params["b_out"][0]
    x1 = x + attn

    g2 = params["ln2_g"].reshape(P, 1, 1, E)
    b2 = params["ln2_b"].reshape(P, 1, 1, E)
    gg = ln(x1, g2, b2)
    m = jnp.einsum("pbse,eh->pbsh", gg, params["w1_t"], precision=hp)
    m = 0.5 * m * (1.0 + lax.erf(m * (1.0 / math.sqrt(2.0))))
    y = jnp.einsum("pbsh,he->pbse", m, params["w2_t"], precision=hp)
    return x1 + y


def make_params(key, embed_dim, hidden_dim, num_parallel=3):
    E, H = embed_dim, hidden_dim
    ks = jax.random.split(key, 10)
    # PyTorch-convention weights, initialized deterministically in-script.
    in_proj_w = jax.random.normal(ks[0], (3 * E, E), jnp.float32) / math.sqrt(E)
    in_proj_b = 0.02 * jax.random.normal(ks[1], (3 * E,), jnp.float32)
    out_proj_w = jax.random.normal(ks[2], (E, E), jnp.float32) / math.sqrt(E)
    out_proj_b = 0.02 * jax.random.normal(ks[3], (E,), jnp.float32)
    ln1_g = 1.0 + 0.1 * jax.random.normal(ks[4], (E,), jnp.float32)
    ln1_b = 0.1 * jax.random.normal(ks[5], (E,), jnp.float32)
    ln2_g = 1.0 + 0.1 * jax.random.normal(ks[6], (num_parallel, E), jnp.float32)
    ln2_b = 0.1 * jax.random.normal(ks[7], (num_parallel, E), jnp.float32)
    conv1_w = jax.random.normal(ks[8], (H, E), jnp.float32) / math.sqrt(E)   # conv1x1 E->H (bias=False)
    conv2_w = jax.random.normal(ks[9], (E, H), jnp.float32) / math.sqrt(H)   # conv1x1 H->E (bias=False)
    # Kernel-layout versions (pre-transposed, 2D for VMEM friendliness).
    return {
        "ln1_g": ln1_g.reshape(1, E),
        "ln1_b": ln1_b.reshape(1, E),
        "win_t": in_proj_w.T,                    # (E, 3E)
        "b_in": in_proj_b.reshape(1, 3 * E),
        "wo_t": out_proj_w.T,                    # (E, E)
        "b_out": out_proj_b.reshape(1, E),
        "ln2_g": ln2_g,                          # (P, E) per-modality
        "ln2_b": ln2_b,                          # (P, E)
        "w1_t": conv1_w.T,                       # (E, H)
        "w2_t": conv2_w.T,                       # (H, E)
    }


if __name__ == "__main__":
    EMBED_DIM = 32
    HIDDEN_DIM = 64
    NUM_HEADS = 4
    NUM_PARALLEL = 3   # fixed by LayerNormParallel(embed_dim, num_parallel=3)
    BATCH = 2
    SEQ = 8

    key = jax.random.PRNGKey(0)
    k_x, k_p = jax.random.split(key)
    x = jax.random.normal(k_x, (NUM_PARALLEL, BATCH, SEQ, EMBED_DIM), jnp.float32)
    params = make_params(k_p, EMBED_DIM, HIDDEN_DIM, NUM_PARALLEL)

    out = attention_block_pallas(x, params, num_heads=NUM_HEADS)
    out = jax.block_until_ready(out)

    ref = attention_block_reference(x, params, num_heads=NUM_HEADS)
    ref = jax.block_until_ready(ref)

    max_err = float(jnp.max(jnp.abs(out - ref)))
    assert out.shape == x.shape and out.dtype == jnp.float32
    assert max_err < 1e-2, f"mismatch vs reference: max abs err = {max_err}"
    print("KERNEL_OK")
</pallas_src>

<mosaic_0001>
module attributes {stable_mosaic.version = 11 : i64} {
  func.func @_attention_block_kernel(%arg0: i32, %arg1: memref<48x32xf32, #tpu.memory_space<vmem>>, %arg2: memref<1x32xf32, #tpu.memory_space<vmem>>, %arg3: memref<1x32xf32, #tpu.memory_space<vmem>>, %arg4: memref<32x32xf32, #tpu.memory_space<vmem>>, %arg5: memref<32x32xf32, #tpu.memory_space<vmem>>, %arg6: memref<32x32xf32, #tpu.memory_space<vmem>>, %arg7: memref<1x32xf32, #tpu.memory_space<vmem>>, %arg8: memref<1x32xf32, #tpu.memory_space<vmem>>, %arg9: memref<1x32xf32, #tpu.memory_space<vmem>>, %arg10: memref<32x32xf32, #tpu.memory_space<vmem>>, %arg11: memref<1x32xf32, #tpu.memory_space<vmem>>, %arg12: memref<48x32xf32, #tpu.memory_space<vmem>>, %arg13: memref<48x32xf32, #tpu.memory_space<vmem>>, %arg14: memref<32x64xf32, #tpu.memory_space<vmem>>, %arg15: memref<64x32xf32, #tpu.memory_space<vmem>>, %arg16: memref<48x48xf32, #tpu.memory_space<vmem>>, %arg17: memref<4x32xf32, #tpu.memory_space<vmem>>, %arg18: memref<48x32xf32, #tpu.memory_space<vmem>>) attributes {dimension_semantics = [#tpu.dimension_semantics<arbitrary>], iteration_bounds = array<i64: 1>, scalar_prefetch = 0 : i64, scratch_operands = 0 : i64, tpu.core_type = #tpu.core_type<tc>, window_params = [{pipeline_mode = #tpu.pipeline_mode<synchronous>, transform_indices = @transform_0, window_bounds = array<i64: 48, 32>}, {pipeline_mode = #tpu.pipeline_mode<synchronous>, transform_indices = @transform_1, window_bounds = array<i64: 1, 32>}, {pipeline_mode = #tpu.pipeline_mode<synchronous>, transform_indices = @transform_2, window_bounds = array<i64: 1, 32>}, {pipeline_mode = #tpu.pipeline_mode<synchronous>, transform_indices = @transform_3, window_bounds = array<i64: 32, 32>}, {pipeline_mode = #tpu.pipeline_mode<synchronous>, transform_indices = @transform_4, window_bounds = array<i64: 32, 32>}, {pipeline_mode = #tpu.pipeline_mode<synchronous>, transform_indices = @transform_5, window_bounds = array<i64: 32, 32>}, {pipeline_mode = #tpu.pipeline_mode<synchronous>, transform_indices = @transform_6, window_bounds = array<i64: 1, 32>}, {pipeline_mode = #tpu.pipeline_mode<synchronous>, transform_indices = @transform_7, window_bounds = array<i64: 1, 32>}, {pipeline_mode = #tpu.pipeline_mode<synchronous>, transform_indices = @transform_8, window_bounds = array<i64: 1, 32>}, {pipeline_mode = #tpu.pipeline_mode<synchronous>, transform_indices = @transform_9, window_bounds = array<i64: 32, 32>}, {pipeline_mode = #tpu.pipeline_mode<synchronous>, transform_indices = @transform_10, window_bounds = array<i64: 1, 32>}, {pipeline_mode = #tpu.pipeline_mode<synchronous>, transform_indices = @transform_11, window_bounds = array<i64: 48, 32>}, {pipeline_mode = #tpu.pipeline_mode<synchronous>, transform_indices = @transform_12, window_bounds = array<i64: 48, 32>}, {pipeline_mode = #tpu.pipeline_mode<synchronous>, transform_indices = @transform_13, window_bounds = array<i64: 32, 64>}, {pipeline_mode = #tpu.pipeline_mode<synchronous>, transform_indices = @transform_14, window_bounds = array<i64: 64, 32>}, {pipeline_mode = #tpu.pipeline_mode<synchronous>, transform_indices = @transform_15, window_bounds = array<i64: 48, 48>}, {pipeline_mode = #tpu.pipeline_mode<synchronous>, transform_indices = @transform_16, window_bounds = array<i64: 4, 32>}, {pipeline_mode = #tpu.pipeline_mode<synchronous>, transform_indices = @transform_17, window_bounds = array<i64: 48, 32>}]} {
    %c0 = arith.constant 0 : index
    %c0_0 = arith.constant 0 : index
    %0 = vector.load %arg1[%c0, %c0_0] : memref<48x32xf32, #tpu.memory_space<vmem>>, vector<48x32xf32>
    %cst = arith.constant dense<0.000000e+00> : vector<48xf32>
    %1 = vector.multi_reduction <add>, %0, %cst [1] : vector<48x32xf32> to vector<48xf32>
    %2 = vector.shape_cast %1 : vector<48xf32> to vector<48x1xf32>
    %cst_1 = arith.constant 3.200000e+01 : f32
    %3 = vector.broadcast %cst_1 : f32 to vector<48x1xf32>
    %4 = arith.divf %2, %3 : vector<48x1xf32>
    %5 = vector.broadcast %4 : vector<48x1xf32> to vector<48x32xf32>
    %6 = arith.subf %0, %5 : vector<48x32xf32>
    %7 = arith.mulf %6, %6 : vector<48x32xf32>
    %cst_2 = arith.constant dense<0.000000e+00> : vector<48xf32>
    %8 = vector.multi_reduction <add>, %7, %cst_2 [1] : vector<48x32xf32> to vector<48xf32>
    %9 = vector.shape_cast %8 : vector<48xf32> to vector<48x1xf32>
    %cst_3 = arith.constant 3.200000e+01 : f32
    %10 = vector.broadcast %cst_3 : f32 to vector<48x1xf32>
    %11 = arith.divf %9, %10 : vector<48x1xf32>
    %cst_4 = arith.constant 9.99999974E-6 : f32
    %12 = vector.broadcast %cst_4 : f32 to vector<48x1xf32>
    %13 = arith.addf %11, %12 : vector<48x1xf32>
    %14 = math.rsqrt %13 : vector<48x1xf32>
    %15 = vector.broadcast %14 : vector<48x1xf32> to vector<48x32xf32>
    %16 = arith.mulf %6, %15 : vector<48x32xf32>
    %c0_5 = arith.constant 0 : index
    %c0_6 = arith.constant 0 : index
    %17 = vector.load %arg2[%c0_5, %c0_6] : memref<1x32xf32, #tpu.memory_space<vmem>>, vector<1x32xf32>
    %18 = vector.broadcast %17 : vector<1x32xf32> to vector<48x32xf32>
    %19 = arith.mulf %16, %18 : vector<48x32xf32>
    %c0_7 = arith.constant 0 : index
    %c0_8 = arith.constant 0 : index
    %20 = vector.load %arg3[%c0_7, %c0_8] : memref<1x32xf32, #tpu.memory_space<vmem>>, vector<1x32xf32>
    %21 = vector.broadcast %20 : vector<1x32xf32> to vector<48x32xf32>
    %22 = arith.addf %19, %21 : vector<48x32xf32>
    %c0_9 = arith.constant 0 : index
    %c0_10 = arith.constant 0 : index
    %23 = vector.load %arg4[%c0_9, %c0_10] : memref<32x32xf32, #tpu.memory_space<vmem>>, vector<32x32xf32>
    %cst_11 = arith.constant dense<0.000000e+00> : vector<48x32xf32>
    %24 = tpu.matmul %22, %23, %cst_11 {dimension_numbers = #tpu.dot_dimension_numbers<[1], [0], [0], [1], [0, 0, 1, 1], [], []>} : vector<48x32xf32>, vector<32x32xf32>, vector<48x32xf32> -> vector<48x32xf32>
    %c0_12 = arith.constant 0 : index
    %c0_13 = arith.constant 0 : index
    %25 = vector.load %arg7[%c0_12, %c0_13] : memref<1x32xf32, #tpu.memory_space<vmem>>, vector<1x32xf32>
    %26 = vector.broadcast %25 : vector<1x32xf32> to vector<48x32xf32>
    %27 = arith.addf %24, %26 : vector<48x32xf32>
    %c0_14 = arith.constant 0 : index
    %c0_15 = arith.constant 0 : index
    %28 = vector.load %arg5[%c0_14, %c0_15] : memref<32x32xf32, #tpu.memory_space<vmem>>, vector<32x32xf32>
    %cst_16 = arith.constant dense<0.000000e+00> : vector<48x32xf32>
    %29 = tpu.matmul %22, %28, %cst_16 {dimension_numbers = #tpu.dot_dimension_numbers<[1], [0], [0], [1], [0, 0, 1, 1], [], []>} : vector<48x32xf32>, vector<32x32xf32>, vector<48x32xf32> -> vector<48x32xf32>
    %c0_17 = arith.constant 0 : index
    %c0_18 = arith.constant 0 : index
    %30 = vector.load %arg8[%c0_17, %c0_18] : memref<1x32xf32, #tpu.memory_space<vmem>>, vector<1x32xf32>
    %31 = vector.broadcast %30 : vector<1x32xf32> to vector<48x32xf32>
    %32 = arith.addf %29, %31 : vector<48x32xf32>
    %c0_19 = arith.constant 0 : index
    %c0_20 = arith.constant 0 : index
    %33 = vector.load %arg6[%c0_19, %c0_20] : memref<32x32xf32, #tpu.memory_space<vmem>>, vector<32x32xf32>
    %cst_21 = arith.constant dense<0.000000e+00> : vector<48x32xf32>
    %34 = tpu.matmul %22, %33, %cst_21 {dimension_numbers = #tpu.dot_dimension_numbers<[1], [0], [0], [1], [0, 0, 1, 1], [], []>} : vector<48x32xf32>, vector<32x32xf32>, vector<48x32xf32> -> vector<48x32xf32>
    %c0_22 = arith.constant 0 : index
    %c0_23 = arith.constant 0 : index
    %35 = vector.load %arg9[%c0_22, %c0_23] : memref<1x32xf32, #tpu.memory_space<vmem>>, vector<1x32xf32>
    %36 = vector.broadcast %35 : vector<1x32xf32> to vector<48x32xf32>
    %37 = arith.addf %34, %36 : vector<48x32xf32>
    %cst_24 = arith.constant 0.353553385 : f32
    %38 = vector.broadcast %cst_24 : f32 to vector<48x32xf32>
    %39 = arith.mulf %27, %38 : vector<48x32xf32>
    %c0_25 = arith.constant 0 : index
    %c0_26 = arith.constant 0 : index
    %40 = vector.load %arg16[%c0_25, %c0_26] : memref<48x48xf32, #tpu.memory_space<vmem>>, vector<48x48xf32>
    %c0_27 = arith.constant 0 : index
    %c0_28 = arith.constant 0 : index
    %41 = vector.load %arg17[%c0_27, %c0_28] : memref<4x32xf32, #tpu.memory_space<vmem>>, vector<4x32xf32>
    %cst_29 = arith.constant 0.000000e+00 : f32
    %42 = vector.broadcast %cst_29 : f32 to vector<48x32xf32>
    %43 = vector.extract_strided_slice %41 {offsets = [0, 0], sizes = [1, 32], strides = [1, 1]} : vector<4x32xf32> to vector<1x32xf32>
    %44 = vector.broadcast %43 : vector<1x32xf32> to vector<48x32xf32>
    %45 = arith.mulf %39, %44 : vector<48x32xf32>
    %cst_30 = arith.constant dense<0.000000e+00> : vector<48x48xf32>
    %46 = tpu.matmul %45, %32, %cst_30 {dimension_numbers = #tpu.dot_dimension_numbers<[1], [1], [0], [0], [0, 0, 1, 0], [], []>} : vector<48x32xf32>, vector<48x32xf32>, vector<48x48xf32> -> vector<48x48xf32>
    %47 = arith.addf %46, %40 : vector<48x48xf32>
    %cst_31 = arith.constant dense<0xFF800000> : vector<48xf32>
    %48 = vector.multi_reduction <maximumf>, %47, %cst_31 [1] : vector<48x48xf32> to vector<48xf32>
    %49 = vector.shape_cast %48 : vector<48xf32> to vector<48x1xf32>
    %50 = vector.broadcast %49 : vector<48x1xf32> to vector<48x48xf32>
    %51 = arith.subf %47, %50 : vector<48x48xf32>
    %52 = math.exp %51 : vector<48x48xf32>
    %cst_32 = arith.constant dense<0.000000e+00> : vector<48xf32>
    %53 = vector.multi_reduction <add>, %52, %cst_32 [1] : vector<48x48xf32> to vector<48xf32>
    %54 = vector.shape_cast %53 : vector<48xf32> to vector<48x1xf32>
    %55 = tpu.reciprocal %54 {approx = true} : vector<48x1xf32> -> vector<48x1xf32>
    %56 = vector.broadcast %55 : vector<48x1xf32> to vector<48x48xf32>
    %57 = arith.mulf %52, %56 : vector<48x48xf32>
    %58 = vector.broadcast %43 : vector<1x32xf32> to vector<48x32xf32>
    %59 = arith.mulf %37, %58 : vector<48x32xf32>
    %cst_33 = arith.constant dense<0.000000e+00> : vector<48x32xf32>
    %60 = tpu.matmul %57, %59, %cst_33 {dimension_numbers = #tpu.dot_dimension_numbers<[1], [0], [0], [1], [0, 0, 1, 1], [], []>} : vector<48x48xf32>, vector<48x32xf32>, vector<48x32xf32> -> vector<48x32xf32>
    %61 = arith.addf %42, %60 : vector<48x32xf32>
    %62 = vector.extract_strided_slice %41 {offsets = [1, 0], sizes = [1, 32], strides = [1, 1]} : vector<4x32xf32> to vector<1x32xf32>
    %63 = vector.broadcast %62 : vector<1x32xf32> to vector<48x32xf32>
    %64 = arith.mulf %39, %63 : vector<48x32xf32>
    %cst_34 = arith.constant dense<0.000000e+00> : vector<48x48xf32>
    %65 = tpu.matmul %64, %32, %cst_34 {dimension_numbers = #tpu.dot_dimension_numbers<[1], [1], [0], [0], [0, 0, 1, 0], [], []>} : vector<48x32xf32>, vector<48x32xf32>, vector<48x48xf32> -> vector<48x48xf32>
    %66 = arith.addf %65, %40 : vector<48x48xf32>
    %cst_35 = arith.constant dense<0xFF800000> : vector<48xf32>
    %67 = vector.multi_reduction <maximumf>, %66, %cst_35 [1] : vector<48x48xf32> to vector<48xf32>
    %68 = vector.shape_cast %67 : vector<48xf32> to vector<48x1xf32>
    %69 = vector.broadcast %68 : vector<48x1xf32> to vector<48x48xf32>
    %70 = arith.subf %66, %69 : vector<48x48xf32>
    %71 = math.exp %70 : vector<48x48xf32>
    %cst_36 = arith.constant dense<0.000000e+00> : vector<48xf32>
    %72 = vector.multi_reduction <add>, %71, %cst_36 [1] : vector<48x48xf32> to vector<48xf32>
    %73 = vector.shape_cast %72 : vector<48xf32> to vector<48x1xf32>
    %74 = tpu.reciprocal %73 {approx = true} : vector<48x1xf32> -> vector<48x1xf32>
    %75 = vector.broadcast %74 : vector<48x1xf32> to vector<48x48xf32>
    %76 = arith.mulf %71, %75 : vector<48x48xf32>
    %77 = vector.broadcast %62 : vector<1x32xf32> to vector<48x32xf32>
    %78 = arith.mulf %37, %77 : vector<48x32xf32>
    %cst_37 = arith.constant dense<0.000000e+00> : vector<48x32xf32>
    %79 = tpu.matmul %76, %78, %cst_37 {dimension_numbers = #tpu.dot_dimension_numbers<[1], [0], [0], [1], [0, 0, 1, 1], [], []>} : vector<48x48xf32>, vector<48x32xf32>, vector<48x32xf32> -> vector<48x32xf32>
    %80 = arith.addf %61, %79 : vector<48x32xf32>
    %81 = vector.extract_strided_slice %41 {offsets = [2, 0], sizes = [1, 32], strides = [1, 1]} : vector<4x32xf32> to vector<1x32xf32>
    %82 = vector.broadcast %81 : vector<1x32xf32> to vector<48x32xf32>
    %83 = arith.mulf %39, %82 : vector<48x32xf32>
    %cst_38 = arith.constant dense<0.000000e+00> : vector<48x48xf32>
    %84 = tpu.matmul %83, %32, %cst_38 {dimension_numbers = #tpu.dot_dimension_numbers<[1], [1], [0], [0], [0, 0, 1, 0], [], []>} : vector<48x32xf32>, vector<48x32xf32>, vector<48x48xf32> -> vector<48x48xf32>
    %85 = arith.addf %84, %40 : vector<48x48xf32>
    %cst_39 = arith.constant dense<0xFF800000> : vector<48xf32>
    %86 = vector.multi_reduction <maximumf>, %85, %cst_39 [1] : vector<48x48xf32> to vector<48xf32>
    %87 = vector.shape_cast %86 : vector<48xf32> to vector<48x1xf32>
    %88 = vector.broadcast %87 : vector<48x1xf32> to vector<48x48xf32>
    %89 = arith.subf %85, %88 : vector<48x48xf32>
    %90 = math.exp %89 : vector<48x48xf32>
    %cst_40 = arith.constant dense<0.000000e+00> : vector<48xf32>
    %91 = vector.multi_reduction <add>, %90, %cst_40 [1] : vector<48x48xf32> to vector<48xf32>
    %92 = vector.shape_cast %91 : vector<48xf32> to vector<48x1xf32>
    %93 = tpu.reciprocal %92 {approx = true} : vector<48x1xf32> -> vector<48x1xf32>
    %94 = vector.broadcast %93 : vector<48x1xf32> to vector<48x48xf32>
    %95 = arith.mulf %90, %94 : vector<48x48xf32>
    %96 = vector.broadcast %81 : vector<1x32xf32> to vector<48x32xf32>
    %97 = arith.mulf %37, %96 : vector<48x32xf32>
    %cst_41 = arith.constant dense<0.000000e+00> : vector<48x32xf32>
    %98 = tpu.matmul %95, %97, %cst_41 {dimension_numbers = #tpu.dot_dimension_numbers<[1], [0], [0], [1], [0, 0, 1, 1], [], []>} : vector<48x48xf32>, vector<48x32xf32>, vector<48x32xf32> -> vector<48x32xf32>
    %99 = arith.addf %80, %98 : vector<48x32xf32>
    %100 = vector.extract_strided_slice %41 {offsets = [3, 0], sizes = [1, 32], strides = [1, 1]} : vector<4x32xf32> to vector<1x32xf32>
    %101 = vector.broadcast %100 : vector<1x32xf32> to vector<48x32xf32>
    %102 = arith.mulf %39, %101 : vector<48x32xf32>
    %cst_42 = arith.constant dense<0.000000e+00> : vector<48x48xf32>
    %103 = tpu.matmul %102, %32, %cst_42 {dimension_numbers = #tpu.dot_dimension_numbers<[1], [1], [0], [0], [0, 0, 1, 0], [], []>} : vector<48x32xf32>, vector<48x32xf32>, vector<48x48xf32> -> vector<48x48xf32>
    %104 = arith.addf %103, %40 : vector<48x48xf32>
    %cst_43 = arith.constant dense<0xFF800000> : vector<48xf32>
    %105 = vector.multi_reduction <maximumf>, %104, %cst_43 [1] : vector<48x48xf32> to vector<48xf32>
    %106 = vector.shape_cast %105 : vector<48xf32> to vector<48x1xf32>
    %107 = vector.broadcast %106 : vector<48x1xf32> to vector<48x48xf32>
    %108 = arith.subf %104, %107 : vector<48x48xf32>
    %109 = math.exp %108 : vector<48x48xf32>
    %cst_44 = arith.constant dense<0.000000e+00> : vector<48xf32>
    %110 = vector.multi_reduction <add>, %109, %cst_44 [1] : vector<48x48xf32> to vector<48xf32>
    %111 = vector.shape_cast %110 : vector<48xf32> to vector<48x1xf32>
    %112 = tpu.reciprocal %111 {approx = true} : vector<48x1xf32> -> vector<48x1xf32>
    %113 = vector.broadcast %112 : vector<48x1xf32> to vector<48x48xf32>
    %114 = arith.mulf %109, %113 : vector<48x48xf32>
    %115 = vector.broadcast %100 : vector<1x32xf32> to vector<48x32xf32>
    %116 = arith.mulf %37, %115 : vector<48x32xf32>
    %cst_45 = arith.constant dense<0.000000e+00> : vector<48x32xf32>
    %117 = tpu.matmul %114, %116, %cst_45 {dimension_numbers = #tpu.dot_dimension_numbers<[1], [0], [0], [1], [0, 0, 1, 1], [], []>} : vector<48x48xf32>, vector<48x32xf32>, vector<48x32xf32> -> vector<48x32xf32>
    %118 = arith.addf %99, %117 : vector<48x32xf32>
    %c0_46 = arith.constant 0 : index
    %c0_47 = arith.constant 0 : index
    %119 = vector.load %arg10[%c0_46, %c0_47] : memref<32x32xf32, #tpu.memory_space<vmem>>, vector<32x32xf32>
    %cst_48 = arith.constant dense<0.000000e+00> : vector<48x32xf32>
    %120 = tpu.matmul %118, %119, %cst_48 {dimension_numbers = #tpu.dot_dimension_numbers<[1], [0], [0], [1], [0, 0, 1, 1], [], []>} : vector<48x32xf32>, vector<32x32xf32>, vector<48x32xf32> -> vector<48x32xf32>
    %c0_49 = arith.constant 0 : index
    %c0_50 = arith.constant 0 : index
    %121 = vector.load %arg11[%c0_49, %c0_50] : memref<1x32xf32, #tpu.memory_space<vmem>>, vector<1x32xf32>
    %122 = vector.broadcast %121 : vector<1x32xf32> to vector<48x32xf32>
    %123 = arith.addf %120, %122 : vector<48x32xf32>
    %124 = arith.addf %0, %123 : vector<48x32xf32>
    %cst_51 = arith.constant dense<0.000000e+00> : vector<48xf32>
    %125 = vector.multi_reduction <add>, %124, %cst_51 [1] : vector<48x32xf32> to vector<48xf32>
    %126 = vector.shape_cast %125 : vector<48xf32> to vector<48x1xf32>
    %cst_52 = arith.constant 3.200000e+01 : f32
    %127 = vector.broadcast %cst_52 : f32 to vector<48x1xf32>
    %128 = arith.divf %126, %127 : vector<48x1xf32>
    %129 = vector.broadcast %128 : vector<48x1xf32> to vector<48x32xf32>
    %130 = arith.subf %124, %129 : vector<48x32xf32>
    %131 = arith.mulf %130, %130 : vector<48x32xf32>
    %cst_53 = arith.constant dense<0.000000e+00> : vector<48xf32>
    %132 = vector.multi_reduction <add>, %131, %cst_53 [1] : vector<48x32xf32> to vector<48xf32>
    %133 = vector.shape_cast %132 : vector<48xf32> to vector<48x1xf32>
    %cst_54 = arith.constant 3.200000e+01 : f32
    %134 = vector.broadcast %cst_54 : f32 to vector<48x1xf32>
    %135 = arith.divf %133, %134 : vector<48x1xf32>
    %cst_55 = arith.constant 9.99999974E-6 : f32
    %136 = vector.broadcast %cst_55 : f32 to vector<48x1xf32>
    %137 = arith.addf %135, %136 : vector<48x1xf32>
    %138 = math.rsqrt %137 : vector<48x1xf32>
    %139 = vector.broadcast %138 : vector<48x1xf32> to vector<48x32xf32>
    %140 = arith.mulf %130, %139 : vector<48x32xf32>
    %c0_56 = arith.constant 0 : index
    %c0_57 = arith.constant 0 : index
    %141 = vector.load %arg12[%c0_56, %c0_57] : memref<48x32xf32, #tpu.memory_space<vmem>>, vector<48x32xf32>
    %142 = arith.mulf %140, %141 : vector<48x32xf32>
    %c0_58 = arith.constant 0 : index
    %c0_59 = arith.constant 0 : index
    %143 = vector.load %arg13[%c0_58, %c0_59] : memref<48x32xf32, #tpu.memory_space<vmem>>, vector<48x32xf32>
    %144 = arith.addf %142, %143 : vector<48x32xf32>
    %c0_60 = arith.constant 0 : index
    %c0_61 = arith.constant 0 : index
    %145 = vector.load %arg14[%c0_60, %c0_61] : memref<32x64xf32, #tpu.memory_space<vmem>>, vector<32x64xf32>
    %cst_62 = arith.constant dense<0.000000e+00> : vector<48x64xf32>
    %146 = tpu.matmul %144, %145, %cst_62 {dimension_numbers = #tpu.dot_dimension_numbers<[1], [0], [0], [1], [0, 0, 1, 1], [], []>} : vector<48x32xf32>, vector<32x64xf32>, vector<48x64xf32> -> vector<48x64xf32>
    %147 = arith.mulf %146, %146 : vector<48x64xf32>
    %148 = arith.mulf %146, %147 : vector<48x64xf32>
    %cst_63 = arith.constant 4.471500e-02 : f32
    %149 = vector.broadcast %cst_63 : f32 to vector<48x64xf32>
    %150 = arith.mulf %149, %148 : vector<48x64xf32>
    %151 = arith.addf %146, %150 : vector<48x64xf32>
    %cst_64 = arith.constant 0.797884583 : f32
    %152 = vector.broadcast %cst_64 : f32 to vector<48x64xf32>
    %153 = arith.mulf %152, %151 : vector<48x64xf32>
    %154 = math.tanh %153 : vector<48x64xf32>
    %cst_65 = arith.constant 1.000000e+00 : f32
    %155 = vector.broadcast %cst_65 : f32 to vector<48x64xf32>
    %156 = arith.addf %155, %154 : vector<48x64xf32>
    %cst_66 = arith.constant 5.000000e-01 : f32
    %157 = vector.broadcast %cst_66 : f32 to vector<48x64xf32>
    %158 = arith.mulf %157, %156 : vector<48x64xf32>
    %159 = arith.mulf %146, %158 : vector<48x64xf32>
    %c0_67 = arith.constant 0 : index
    %c0_68 = arith.constant 0 : index
    %160 = vector.load %arg15[%c0_67, %c0_68] : memref<64x32xf32, #tpu.memory_space<vmem>>, vector<64x32xf32>
    %cst_69 = arith.constant dense<0.000000e+00> : vector<48x32xf32>
    %161 = tpu.matmul %159, %160, %cst_69 {dimension_numbers = #tpu.dot_dimension_numbers<[1], [0], [0], [1], [0, 0, 1, 1], [], []>} : vector<48x64xf32>, vector<64x32xf32>, vector<48x32xf32> -> vector<48x32xf32>
    %162 = arith.addf %124, %161 : vector<48x32xf32>
    %c0_70 = arith.constant 0 : index
    %c0_71 = arith.constant 0 : index
    %163 = vector.load %arg18[%c0_70, %c0_71] : memref<48x32xf32, #tpu.memory_space<vmem>>, vector<48x32xf32>
    tpu.vector_store %arg18[%c0_70, %c0_71], %162 {strides = array<i32>} : memref<48x32xf32, #tpu.memory_space<vmem>>, vector<48x32xf32>,
    return
  }
  func.func @transform_0(%arg0: i32) -> (i32, i32) {
    %c0_i32 = arith.constant 0 : i32
    %c0_i32_0 = arith.constant 0 : i32
    %c0_i32_1 = arith.constant 0 : i32
    return %c0_i32, %c0_i32_0 : i32, i32
  }
  func.func @transform_1(%arg0: i32) -> (i32, i32) {
    %c0_i32 = arith.constant 0 : i32
    %c0_i32_0 = arith.constant 0 : i32
    %c0_i32_1 = arith.constant 0 : i32
    return %c0_i32, %c0_i32_0 : i32, i32
  }
  func.func @transform_2(%arg0: i32) -> (i32, i32) {
    %c0_i32 = arith.constant 0 : i32
    %c0_i32_0 = arith.constant 0 : i32
    %c0_i32_1 = arith.constant 0 : i32
    return %c0_i32, %c0_i32_0 : i32, i32
  }
  func.func @transform_3(%arg0: i32) -> (i32, i32) {
    %c0_i32 = arith.constant 0 : i32
    %c0_i32_0 = arith.constant 0 : i32
    %c0_i32_1 = arith.constant 0 : i32
    return %c0_i32, %c0_i32_0 : i32, i32
  }
  func.func @transform_4(%arg0: i32) -> (i32, i32) {
    %c0_i32 = arith.constant 0 : i32
    %c0_i32_0 = arith.constant 0 : i32
    %c0_i32_1 = arith.constant 0 : i32
    return %c0_i32, %c0_i32_0 : i32, i32
  }
  func.func @transform_5(%arg0: i32) -> (i32, i32) {
    %c0_i32 = arith.constant 0 : i32
    %c0_i32_0 = arith.constant 0 : i32
    %c0_i32_1 = arith.constant 0 : i32
    return %c0_i32, %c0_i32_0 : i32, i32
  }
  func.func @transform_6(%arg0: i32) -> (i32, i32) {
    %c0_i32 = arith.constant 0 : i32
    %c0_i32_0 = arith.constant 0 : i32
    %c0_i32_1 = arith.constant 0 : i32
    return %c0_i32, %c0_i32_0 : i32, i32
  }
  func.func @transform_7(%arg0: i32) -> (i32, i32) {
    %c0_i32 = arith.constant 0 : i32
    %c0_i32_0 = arith.constant 0 : i32
    %c0_i32_1 = arith.constant 0 : i32
    return %c0_i32, %c0_i32_0 : i32, i32
  }
  func.func @transform_8(%arg0: i32) -> (i32, i32) {
    %c0_i32 = arith.constant 0 : i32
    %c0_i32_0 = arith.constant 0 : i32
    %c0_i32_1 = arith.constant 0 : i32
    return %c0_i32, %c0_i32_0 : i32, i32
  }
  func.func @transform_9(%arg0: i32) -> (i32, i32) {
    %c0_i32 = arith.constant 0 : i32
    %c0_i32_0 = arith.constant 0 : i32
    %c0_i32_1 = arith.constant 0 : i32
    return %c0_i32, %c0_i32_0 : i32, i32
  }
  func.func @transform_10(%arg0: i32) -> (i32, i32) {
    %c0_i32 = arith.constant 0 : i32
    %c0_i32_0 = arith.constant 0 : i32
    %c0_i32_1 = arith.constant 0 : i32
    return %c0_i32, %c0_i32_0 : i32, i32
  }
  func.func @transform_11(%arg0: i32) -> (i32, i32) {
    %c0_i32 = arith.constant 0 : i32
    %c0_i32_0 = arith.constant 0 : i32
    %c0_i32_1 = arith.constant 0 : i32
    return %c0_i32, %c0_i32_0 : i32, i32
  }
  func.func @transform_12(%arg0: i32) -> (i32, i32) {
    %c0_i32 = arith.constant 0 : i32
    %c0_i32_0 = arith.constant 0 : i32
    %c0_i32_1 = arith.constant 0 : i32
    return %c0_i32, %c0_i32_0 : i32, i32
  }
  func.func @transform_13(%arg0: i32) -> (i32, i32) {
    %c0_i32 = arith.constant 0 : i32
    %c0_i32_0 = arith.constant 0 : i32
    %c0_i32_1 = arith.constant 0 : i32
    return %c0_i32, %c0_i32_0 : i32, i32
  }
  func.func @transform_14(%arg0: i32) -> (i32, i32) {
    %c0_i32 = arith.constant 0 : i32
    %c0_i32_0 = arith.constant 0 : i32
    %c0_i32_1 = arith.constant 0 : i32
    return %c0_i32, %c0_i32_0 : i32, i32
  }
  func.func @transform_15(%arg0: i32) -> (i32, i32) {
    %c0_i32 = arith.constant 0 : i32
    %c0_i32_0 = arith.constant 0 : i32
    %c0_i32_1 = arith.constant 0 : i32
    return %c0_i32, %c0_i32_0 : i32, i32
  }
  func.func @transform_16(%arg0: i32) -> (i32, i32) {
    %c0_i32 = arith.constant 0 : i32
    %c0_i32_0 = arith.constant 0 : i32
    %c0_i32_1 = arith.constant 0 : i32
    return %c0_i32, %c0_i32_0 : i32, i32
  }
  func.func @transform_17(%arg0: i32) -> (i32, i32) {
    %c0_i32 = arith.constant 0 : i32
    %c0_i32_0 = arith.constant 0 : i32
    %c0_i32_1 = arith.constant 0 : i32
    return %c0_i32, %c0_i32_0 : i32, i32
  }
}

</mosaic_0001>

<bundles_post_ra>
// kernel: tpu_custom_call.1
= control target key start
LH: loop header
LB: loop body
LE: loop exit
PB: predicated region body
PF: predicated region fallthrough
CT: control target
= control target key end

     0   :  { %vm62_vm0 = vcmask 261120   ;;  %vm658_vm1 = vcmask 392192   ;;  %vm2191_vm2 = vcmask 523264   ;;  %s4015_s0 = inlined_call_operand.vmem [shape: f32[48,32], index: 0, kind: input, shape index: {}]   ;;  %s4016_s3 = inlined_call_operand.vmem [shape: f32[32,32], index: 3, kind: input, shape index: {}]   ;;  %s4017_s4 = inlined_call_operand.vmem [shape: f32[32,32], index: 4, kind: input, shape index: {}]   ;;  %s4018_s5 = inlined_call_operand.vmem [shape: f32[32,32], index: 5, kind: input, shape index: {}]   ;;  %s4019_s1 = inlined_call_operand.vmem [shape: f32[1,32], index: 1, kind: input, shape index: {}]   ;;  %s4020_s2 = inlined_call_operand.vmem [shape: f32[1,32], index: 2, kind: input, shape index: {}]   ;;  %s4021_s16 = inlined_call_operand.vmem [shape: f32[4,32], index: 16, kind: input, shape index: {}]   ;;  %s4022_s6 = inlined_call_operand.vmem [shape: f32[1,32], index: 6, kind: input, shape index: {}]   ;;  %s4023_s7 = inlined_call_operand.vmem [shape: f32[1,32], index: 7, kind: input, shape index: {}]   ;;  %s4024_s8 = inlined_call_operand.vmem [shape: f32[1,32], index: 8, kind: input, shape index: {}]   ;;  %s4025_s15 = inlined_call_operand.vmem [shape: f32[48,48], index: 15, kind: input, shape index: {}]   ;;  %s4026_s9 = inlined_call_operand.vmem [shape: f32[32,32], index: 9, kind: input, shape index: {}]   ;;  %s4027_s10 = inlined_call_operand.vmem [shape: f32[1,32], index: 10, kind: input, shape index: {}]   ;;  %s4028_s13 = inlined_call_operand.vmem [shape: f32[32,64], index: 13, kind: input, shape index: {}]   ;;  %s4029_s11 = inlined_call_operand.vmem [shape: f32[48,32], index: 11, kind: input, shape index: {}]   ;;  %s4030_s12 = inlined_call_operand.vmem [shape: f32[48,32], index: 12, kind: input, shape index: {}]   ;;  %s4031_s14 = inlined_call_operand.vmem [shape: f32[64,32], index: 14, kind: input, shape index: {}]   ;;  %s4032_s17 = inlined_call_operand.vmem [shape: f32[48,32], index: 17, kind: output, shape index: {}]  }
   0x1   :  { %4035 = sst [smem:[#allocation2_spill]] %s4015_s0  ;;  %v295_v43 = vld [vmem:[%s4017_s4 + $0x18] sm:$0xff]  ;;  %v294_v45 = vld [vmem:[%s4017_s4 + $0x10] sm:$0xff]  ;;  %v293_v47 = vld [vmem:[%s4017_s4 + $0x8] sm:$0xff] }
   0x2   :  { %4036 = sst [smem:[#allocation3_spill]] %s4016_s3  ;;  %2612 = vmatprep.subr.mxu1 %v295_v43  ;;  %v292_v49 = vld [vmem:[%s4017_s4] sm:$0xff]  ;;  %v401_v50 = vld [vmem:[%s4018_s5 + $0x18] sm:$0xff] }
   0x3   :  { %s4037_s26 = sld [smem:[#allocation2_spill]]  ;;  %2613 = vmatpush3.msra.mxu1 %v295_v43 }
   0x4   :  { %s4038_s24 = sld [smem:[#allocation3_spill]]  ;;  %2614 = vmatprep.subr.mxu1 %v294_v45 }
   0x5   :  { %2615 = vmatpush3.msra.mxu1 %v294_v45 }
   0x6   :  { %2616 = vmatprep.subr.mxu1 %v293_v47 }
   0x7   :  { %2617 = vmatpush3.msra.mxu1 %v293_v47 }
   0x8   :  { %2618 = vmatprep.subr.mxu1 %v292_v49 }
   0x9   :  { %v56_v0 = vld [vmem:[%s4037_s26] sm:$0xff]  ;;  %v58_v1 = vld [vmem:[%s4037_s26 + $0x10] sm:$0xff]  ;;  %v57_v2 = vld [vmem:[%s4037_s26 + $0x8] sm:$0xff]  ;;  %2619 = vmatpush3.msra.mxu1 %v292_v49 }
   0xa   :  { %v63_v3 = vsel %vm62_vm0, %v56_v0, 0.0  ;;  %v69_v4 = vsel %vm62_vm0, %v58_v1, 0.0  ;;  %v59_v5 = vld [vmem:[%s4037_s26 + $0x18] sm:$0xff]  ;;  %v66_v6 = vsel %vm62_vm0, %v57_v2, 0.0  ;;  %v60_v8 = vld [vmem:[%s4037_s26 + $0x20] sm:$0xff]  ;;  %v61_v9 = vld [vmem:[%s4037_s26 + $0x28] sm:$0xff] }
   0xb   :  { %64 = vadd.xlane.f32.xlu0 %v63_v3  ;;  %70 = vadd.xlane.f32.xlu1 %v69_v4  ;;  %v72_v7 = vsel %vm62_vm0, %v59_v5, 0.0  ;;  %v75_v10 = vsel %vm62_vm0, %v60_v8, 0.0  ;;  %v78_v11 = vsel %vm62_vm0, %v61_v9, 0.0  ;;  %v171_v42 = vld [vmem:[%s4038_s24 + $0x18] sm:$0xff]  ;;  %v170_v44 = vld [vmem:[%s4038_s24 + $0x10] sm:$0xff]  ;;  %v169_v46 = vld [vmem:[%s4038_s24 + $0x8] sm:$0xff] }
   0xc   :  { %2595 = vmatprep.subr.mxu0 %v171_v42  ;;  %v168_v48 = vld [vmem:[%s4038_s24] sm:$0xff] }
   0xd   :  { %2596 = vmatpush3.msra.mxu0 %v171_v42 }
   0xe   :  { %2597 = vmatprep.subr.mxu0 %v170_v44 }
   0xf   :  { %67 = vadd.xlane.f32.xlu0 %v66_v6  ;;  %73 = vadd.xlane.f32.xlu1 %v72_v7  ;;  %v2321_v6 = vld [vmem:[%s4019_s1] ss:$0 sm:$0xff] }
  0x10   :  { %2598 = vmatpush3.msra.mxu0 %v170_v44 }
  0x11   :  { %2599 = vmatprep.subr.mxu0 %v169_v46 }
  0x12   :  { %2600 = vmatpush3.msra.mxu0 %v169_v46 }
  0x13   :  { %76 = vadd.xlane.f32.xlu0 %v75_v10  ;;  %79 = vadd.xlane.f32.xlu1 %v78_v11 }
  0x14   :  { %2601 = vmatprep.subr.mxu0 %v168_v48 }
  0x15   :  { %2602 = vmatpush3.msra.mxu0 %v168_v48 }
  0x16   :  { %2629 = vmatprep.subr.mxu0 %v401_v50 }
  0x94   :  { %v65_v12 = vpop.xlane.xlu0 %64  ;;  %v71_v13 = vpop.xlane.xlu1 %70 }
  0x95   :  { %v82_v14 = vmul.f32 0.03125, %v65_v12  ;;  %v84_v15 = vmul.f32 0.03125, %v71_v13 }
  0x97   :  { %v3125_v16 = vsub.f32 %v56_v0, %v82_v14  ;;  %v3127_v17 = vsub.f32 %v58_v1, %v84_v15 }
  0x98   :  { %v68_v18 = vpop.xlane.xlu0 %67  ;;  %v74_v19 = vpop.xlane.xlu1 %73 }
  0x99   :  { %v83_v20 = vmul.f32 0.03125, %v68_v18  ;;  %v85_v21 = vmul.f32 0.03125, %v74_v19  ;;  %v94_v22 = vmul.f32 %v3125_v16, %v3125_v16  ;;  %v96_v23 = vmul.f32 %v3127_v17, %v3127_v17 }
  0x9b   :  { %v3133_v24 = vsub.f32 %v57_v2, %v83_v20  ;;  %v3135_v25 = vsub.f32 %v59_v5, %v85_v21  ;;  %v100_v26 = vsel %vm62_vm0, %v94_v22, 0.0  ;;  %v106_v29 = vsel %vm62_vm0, %v96_v23, 0.0 }
  0x9c   :  { %101 = vadd.xlane.f32.xlu0 %v100_v26  ;;  %v77_v27 = vpop.xlane.xlu0 %76  ;;  %v80_v28 = vpop.xlane.xlu1 %79 }
  0x9d   :  { %v86_v30 = vmul.f32 0.03125, %v77_v27  ;;  %v87_v31 = vmul.f32 0.03125, %v80_v28  ;;  %v95_v32 = vmul.f32 %v3133_v24, %v3133_v24  ;;  %v97_v33 = vmul.f32 %v3135_v25, %v3135_v25 }
  0x9f   :  { %v3143_v34 = vsub.f32 %v60_v8, %v86_v30  ;;  %v3145_v35 = vsub.f32 %v61_v9, %v87_v31  ;;  %v103_v36 = vsel %vm62_vm0, %v95_v32, 0.0  ;;  %v109_v37 = vsel %vm62_vm0, %v97_v33, 0.0  ;;  %v2322_v8 = vld [vmem:[%s4020_s2] ss:$0 sm:$0xff]  ;;  %v399_v31 = vld [vmem:[%s4018_s5 + $0x8] sm:$0xff] }
  0xa0   :  { %107 = vadd.xlane.f32.xlu0 %v106_v29  ;;  %104 = vadd.xlane.f32.xlu1 %v103_v36  ;;  %v398_v33 = vld [vmem:[%s4018_s5] sm:$0xff] }
  0xa1   :  { %v98_v38 = vmul.f32 %v3143_v34, %v3143_v34  ;;  %v99_v39 = vmul.f32 %v3145_v35, %v3145_v35 }
  0xa3   :  { %v112_v40 = vsel %vm62_vm0, %v98_v38, 0.0  ;;  %v115_v41 = vsel %vm62_vm0, %v99_v39, 0.0 }
  0xa4   :  { %110 = vadd.xlane.f32.xlu1 %v109_v37  ;;  %113 = vadd.xlane.f32.xlu0 %v112_v40  ;;  %v516_v37 = vld [vmem:[%s4021_s16] sm:$0xf] }
  0xa5   :  { %v2323_v40 = vld [vmem:[%s4022_s6] ss:$0 sm:$0xff] }
  0xa8   :  { %116 = vadd.xlane.f32.xlu1 %v115_v41 }
 0x125   :  { %v102_v51 = vpop.xlane.xlu0 %101 }
 0x126   :  { %v118_v52 = vmul.f32 0.03125, %v102_v51 }
 0x128   :  { %v124_v53 = vadd.f32 1e-05, %v118_v52 }
 0x129   :  { %v105_v54 = vpop.xlane.xlu1 %104  ;;  %v108_v55 = vpop.xlane.xlu0 %107 }
 0x12a   :  { %2873 = vrsqrt.f32 %v124_v53  ;;  %v119_v56 = vmul.f32 0.03125, %v105_v54  ;;  %v120_v57 = vmul.f32 0.03125, %v108_v55 }
 0x12c   :  { %v125_v58 = vadd.f32 1e-05, %v119_v56  ;;  %v126_v59 = vadd.f32 1e-05, %v120_v57 }
 0x12d   :  { %v111_v60 = vpop.xlane.xlu1 %110  ;;  %v114_v61 = vpop.xlane.xlu0 %113 }
 0x12e   :  { %2875 = vrsqrt.f32 %v125_v58  ;;  %v121_v62 = vmul.f32 0.03125, %v111_v60  ;;  %v122_v63 = vmul.f32 0.03125, %v114_v61 }
 0x12f   :  { %2877 = vrsqrt.f32 %v126_v59 }
 0x130   :  { %v127_v0 = vadd.f32 1e-05, %v121_v62  ;;  %v128_v1 = vadd.f32 1e-05, %v122_v63  ;;  %v3252_v62 = vld [vmem:[%s4023_s7] ss:$0 sm:$0xff] }
 0x131   :  { %v117_v2 = vpop.xlane.xlu1 %116 }
 0x132   :  { %2879 = vrsqrt.f32 %v127_v0  ;;  %v123_v3 = vmul.f32 0.03125, %v117_v2 }
 0x133   :  { %2881 = vrsqrt.f32 %v128_v1 }
 0x134   :  { %v129_v4 = vadd.f32 1e-05, %v123_v3 }
 0x136   :  { %2883 = vrsqrt.f32 %v129_v4 }
 0x137   :  { %v2874_v5 = vpop.eup %2873 }
 0x138   :  { %v136_v7 = vmul.f32 %v2874_v5, %v3125_v16 }
 0x13a   :  { %v149_v9 = vmul.f32 %v2321_v6, %v136_v7 }
 0x13b   :  { %v2876_v10 = vpop.eup %2875 }
 0x13c   :  { %v2878_v11 = vpop.eup %2877  ;;  %v162_v12 = vadd.f32 %v2322_v8, %v149_v9  ;;  %v137_v13 = vmul.f32 %v2876_v10, %v3133_v24 }
 0x13d   :  { %v138_v14 = vmul.f32 %v2878_v11, %v3127_v17  ;;  %v400_v17 = vld [vmem:[%s4018_s5 + $0x10] sm:$0xff]  ;;  %v2337_v11 = vld [vmem:[%s4024_s8] ss:$0 sm:$0xff] }
 0x13e   :  { %2603 = vmatprep.mubr.msk.f32.mxu0 %vm62_vm0, %v162_v12  ;;  %2620 = vmatprep.mubr.msk.f32.mxu1 %vm62_vm0, %v162_v12  ;;  %v150_v15 = vmul.f32 %v2321_v6, %v137_v13 }
 0x13f   :  { %v2880_v18 = vpop.eup %2879  ;;  %v151_v19 = vmul.f32 %v2321_v6, %v138_v14 }
 0x140   :  { %v2882_v16 = vpop.eup %2881  ;;  %v163_v20 = vadd.f32 %v2322_v8, %v150_v15  ;;  %v139_v21 = vmul.f32 %v2880_v18, %v3135_v25 }
 0x141   :  { %v164_v22 = vadd.f32 %v2322_v8, %v151_v19  ;;  %v140_v23 = vmul.f32 %v2882_v16, %v3143_v34  ;;  %v517_v34 = vlaneseq }
 0x142   :  { %2604 = vmatmul.mubr.msk.f32.vlgmr.msra.gmra.mxu0 %vm62_vm0, %v163_v20  ;;  %2621 = vmatmul.mubr.msk.f32.vlgmr.msra.gmra.mxu1 %vm62_vm0, %v163_v20  ;;  %v152_v24 = vmul.f32 %v2321_v6, %v139_v21 }
 0x143   :  { %v2884_v26 = vpop.eup %2883  ;;  %2606 = vmatprep.mubr.msk.f32.mxu0 %vm62_vm0, %v164_v22  ;;  %2623 = vmatprep.mubr.msk.f32.mxu1 %vm62_vm0, %v164_v22  ;;  %v153_v27 = vmul.f32 %v2321_v6, %v140_v23 }
 0x144   :  { %v165_v28 = vadd.f32 %v2322_v8, %v152_v24  ;;  %2630 = vmatpush3.msra.mxu0 %v401_v50  ;;  %v141_v25 = vmul.f32 %v2884_v26, %v3145_v35  ;;  %v518_v35 = vshrl.u32 %v517_v34, 7 }
 0x145   :  { %v166_v29 = vadd.f32 %v2322_v8, %v153_v27  ;;  %2631 = vmatprep.subr.mxu0 %v400_v17 }
 0x146   :  { %2607 = vmatmul.mubr.msk.f32.gmra.mxu0 %vm62_vm0, %v165_v28  ;;  %2624 = vmatmul.mubr.msk.f32.gmra.mxu1 %vm62_vm0, %v165_v28  ;;  %v154_v30 = vmul.f32 %v2321_v6, %v141_v25  ;;  %v1468_v36 = vsub.s32 3, %v518_v35  ;;  %v1154_v39 = vsub.s32 2, %v518_v35  ;;  %v519_v45 = vsub.s32 0, %v518_v35 }
 0x147   :  { %2609 = vmatprep.mubr.msk.f32.mxu0 %vm62_vm0, %v166_v29  ;;  %2626 = vmatprep.mubr.msk.f32.mxu1 %vm62_vm0, %v166_v29  ;;  %v733_v46 = vsub.s32 1, %v518_v35 }
 0x148   :  { %2632 = vmatpush3.msra.mxu0 %v400_v17  ;;  %v167_v32 = vadd.f32 %v2322_v8, %v154_v30  ;;  %v3224_v38 = vrot.slane %v516_v37, %v1468_v36  ;;  %v3231_v44 = vrot.slane %v516_v37, %v1154_v39  ;;  %v3245_v55 = vrot.slane %v516_v37, %v519_v45 }
 0x149   :  { %2633 = vmatprep.subr.mxu0 %v399_v31  ;;  %v3247_v56 = vrot.slane %v516_v37, %v733_v46 }
 0x14a   :  { %2610 = vmatmul.mubr.msk.f32.gmra.mxu0 %vm62_vm0, %v167_v32  ;;  %2627 = vmatmul.mubr.msk.f32.gmra.mxu1 %vm62_vm0, %v167_v32 }
 0x14b   :  { %2634 = vmatpush3.msra.mxu0 %v399_v31  ;;  %2637 = vmatprep.mubr.msk.f32.mxu0 %vm62_vm0, %v162_v12 }
 0x14c   :  { %2635 = vmatprep.subr.mxu0 %v398_v33 }
 0x14d   :  { %2636 = vmatpush3.msra.mxu0 %v398_v33 }
 0x14e   :  { %2638 = vmatmul.mubr.msk.f32.vlgmr.msra.gmra.mxu0 %vm62_vm0, %v163_v20 }
 0x14f   :  { %2640 = vmatprep.mubr.msk.f32.mxu0 %vm62_vm0, %v164_v22 }
 0x152   :  { %2641 = vmatmul.mubr.msk.f32.gmra.mxu0 %vm62_vm0, %v165_v28 }
 0x153   :  { %2643 = vmatprep.mubr.msk.f32.mxu0 %vm62_vm0, %v166_v29 }
 0x156   :  { %2644 = vmatmul.mubr.msk.f32.gmra.mxu0 %vm62_vm0, %v167_v32 }
 0x202   :  { %v2605_v41 = vpop.f32.mrf.mxu0  ;;  %v3229_v42 = vpop.f32.mrf.mxu1 }
 0x203   :  { %v269_v43 = vadd.f32 %v2605_v41, %v2323_v40 }
 0x204   :  { %v263_v47 = vpop.f32.mrf.mxu0  ;;  %v3233_v48 = vpop.f32.mrf.mxu1 }
 0x205   :  { %v3235_v49 = vmul.f32 0.35355338, %v269_v43  ;;  %v264_v50 = vadd.f32 %v2323_v40, %v263_v47 }
 0x206   :  { %v2608_v51 = vpop.f32.mrf.mxu0  ;;  %v2625_v52 = vpop.f32.mrf.mxu1 }
 0x207   :  { %v3239_v53 = vmul.f32 %v3231_v44, %v3235_v49  ;;  %v3243_v54 = vmul.f32 %v3224_v38, %v3235_v49  ;;  %v504_v57 = vmul.f32 0.35355338, %v264_v50  ;;  %v279_v58 = vadd.f32 %v2608_v51, %v2323_v40 }
 0x208   :  { %v273_v59 = vpop.f32.mrf.mxu0  ;;  %v379_v60 = vpop.f32.mrf.mxu1  ;;  %v3320_v26 = vadd.f32 %v2625_v52, %v3252_v62  ;;  %v3383_v50 = vadd.f32 %v3229_v42, %v3252_v62 }
 0x209   :  { %v274_v61 = vadd.f32 %v2323_v40, %v273_v59  ;;  %v3254_v63 = vmul.f32 0.35355338, %v279_v58  ;;  %v521_v2 = vmul.f32 %v3245_v55, %v504_v57  ;;  %v735_v3 = vmul.f32 %v3247_v56, %v504_v57 }
 0x20a   :  { %v2611_v0 = vpop.f32.mrf.mxu0  ;;  %v2628_v1 = vpop.f32.mrf.mxu1  ;;  %v3259_v4 = vmul.f32 %v3231_v44, %v504_v57  ;;  %v3267_v8 = vmul.f32 %v3224_v38, %v504_v57  ;;  %v3357_v36 = vadd.f32 %v3252_v62, %v379_v60  ;;  %v3405_v58 = vadd.f32 %v3252_v62, %v3233_v48 }
 0x20b   :  { %v3261_v5 = vmul.f32 0.35355338, %v274_v61  ;;  %v289_v6 = vadd.f32 %v2611_v0, %v2323_v40  ;;  %v3264_v7 = vadd.f32 %v2628_v1, %v3252_v62  ;;  %2658 = vmatprep.mubr.msk.f32.mxu1 %vm62_vm0, %v521_v2  ;;  %2679 = vmatprep.mubr.msk.f32.mxu0 %vm62_vm0, %v735_v3  ;;  %v3276_v12 = vmul.f32 %v3231_v44, %v3254_v63 }
 0x20c   :  { %v283_v9 = vpop.f32.mrf.mxu0  ;;  %v389_v10 = vpop.f32.mrf.mxu1  ;;  %v3313_v24 = vmul.f32 %v3224_v38, %v3254_v63  ;;  %v522_v48 = vmul.f32 %v3245_v55, %v3235_v49  ;;  %v736_v60 = vmul.f32 %v3247_v56, %v3235_v49  ;;  %v524_v1 = vmul.f32 %v3245_v55, %v3254_v63 }
 0x20d   :  { %v3278_v13 = vmul.f32 0.35355338, %v289_v6  ;;  %v284_v14 = vadd.f32 %v2323_v40, %v283_v9  ;;  %v3281_v15 = vadd.f32 %v3252_v62, %v389_v10  ;;  %2646 = vmatprep.subr.msk.mxu1 %vm62_vm0, %v3264_v7  ;;  %2667 = vmatprep.subr.msk.mxu0 %vm62_vm0, %v3264_v7  ;;  %v3293_v19 = vmul.f32 %v3231_v44, %v3261_v5 }
 0x20e   :  { %v2639_v18 = vpop.f32.mrf.mxu0  ;;  %2647 = vmatpush3.xpose.msk.msra.mxu1 %vm62_vm0, %v3264_v7  ;;  %2668 = vmatpush3.xpose.msk.msra.mxu0 %vm62_vm0, %v3264_v7  ;;  %v3297_v16 = vmul.f32 %v3224_v38, %v3261_v5  ;;  %v523_v61 = vmul.f32 %v3245_v55, %v3261_v5  ;;  %v737_v62 = vmul.f32 %v3247_v56, %v3261_v5 }
 0x20f   :  { %v3299_v20 = vmul.f32 0.35355338, %v284_v14  ;;  %v3301_v21 = vadd.f32 %v2639_v18, %v2337_v11  ;;  %2648 = vmatprep.subr.msk.mxu1 %vm62_vm0, %v3281_v15  ;;  %2669 = vmatprep.subr.msk.mxu0 %vm62_vm0, %v3281_v15  ;;  %v3309_v23 = vmul.f32 %v3231_v44, %v3278_v13  ;;  %v3317_v17 = vmul.f32 %v3224_v38, %v3278_v13 }
 0x210   :  { %v475_v22 = vpop.f32.mrf.mxu0  ;;  %v738_v2 = vmul.f32 %v3247_v56, %v3254_v63  ;;  %v740_v14 = vmul.f32 %v3247_v56, %v3278_v13 }
 0x211   :  { %v3322_v27 = vadd.f32 %v2337_v11, %v475_v22  ;;  %v3330_v25 = vmul.f32 %v3231_v44, %v3299_v20  ;;  %v3334_v29 = vmul.f32 %v3224_v38, %v3301_v21  ;;  %v3346_v33 = vmul.f32 %v3231_v44, %v3301_v21 }
 0x212   :  { %v2642_v28 = vpop.f32.mrf.mxu0  ;;  %2649 = vmatpush3.xpose.msk.msra.mxu1 %vm62_vm0, %v3281_v15  ;;  %2670 = vmatpush3.xpose.msk.msra.mxu0 %vm62_vm0, %v3281_v15  ;;  %v3354_v35 = vmul.f32 %v3224_v38, %v3299_v20  ;;  %v525_v6 = vmul.f32 %v3245_v55, %v3299_v20  ;;  %v739_v9 = vmul.f32 %v3247_v56, %v3299_v20 }
 0x213   :  { %v491_v30 = vadd.f32 %v2642_v28, %v2337_v11  ;;  %2650 = vmatprep.subr.msk.mxu1 %vm62_vm0, %v3320_v26  ;;  %2671 = vmatprep.subr.msk.mxu0 %vm62_vm0, %v3320_v26  ;;  %v3342_v32 = vmul.f32 %v3224_v38, %v3322_v27  ;;  %v3350_v34 = vmul.f32 %v3231_v44, %v3322_v27 }
 0x214   :  { %v485_v31 = vpop.f32.mrf.mxu0  ;;  %v921_v18 = vmul.f32 %v3247_v56, %v3301_v21  ;;  %v726_v20 = vmul.f32 %v3245_v55, %v3301_v21  ;;  %v920_v22 = vmul.f32 %v3247_v56, %v3322_v27  ;;  %v3482_v21 = vld [vmem:[%s4025_s15] sm:$0xff] }
 0x215   :  { %v486_v37 = vadd.f32 %v2337_v11, %v485_v31  ;;  %v3360_v39 = vmul.f32 %v3224_v38, %v491_v30  ;;  %v3367_v41 = vmul.f32 %v3231_v44, %v491_v30  ;;  %v923_v3 = vmul.f32 %v3247_v56, %v491_v30  ;;  %v3489_v31 = vld [vmem:[%s4025_s15 + $0x18] sm:$0xff] }
 0x216   :  { %v2645_v40 = vpop.f32.mrf.mxu0  ;;  %2651 = vmatpush3.xpose.msk.msra.mxu1 %vm62_vm0, %v3320_v26  ;;  %2672 = vmatpush3.xpose.msk.msra.mxu0 %vm62_vm0, %v3320_v26  ;;  %v728_v5 = vmul.f32 %v3245_v55, %v491_v30 }
 0x217   :  { %v3369_v43 = vadd.f32 %v2645_v40, %v2337_v11  ;;  %2652 = vmatprep.subr.msk.mxu1 %vm62_vm0, %v3357_v36  ;;  %2673 = vmatprep.subr.msk.mxu0 %vm62_vm0, %v3357_v36  ;;  %v3376_v46 = vmul.f32 %v3224_v38, %v486_v37  ;;  %v3379_v47 = vmul.f32 %v3231_v44, %v486_v37 }
 0x218   :  { %v495_v45 = vpop.f32.mrf.mxu0  ;;  %v922_v63 = vmul.f32 %v3247_v56, %v486_v37  ;;  %v727_v10 = vmul.f32 %v3245_v55, %v486_v37 }
 0x219   :  { %v496_v51 = vadd.f32 %v2337_v11, %v495_v45  ;;  %v3391_v52 = vmul.f32 %v3224_v38, %v3369_v43  ;;  %v730_v59 = vmul.f32 %v3245_v55, %v3369_v43  ;;  %v526_v11 = vmul.f32 %v3245_v55, %v3278_v13 }
 0x21a   :  { %2653 = vmatpush3.xpose.msk.msra.mxu1 %vm62_vm0, %v3357_v36  ;;  %2674 = vmatpush3.xpose.msk.msra.mxu0 %vm62_vm0, %v3357_v36  ;;  %v725_v13 = vmul.f32 %v3245_v55, %v3322_v27  ;;  %v3469_v28 = vmul.f32 %v3231_v44, %v3369_v43 }
 0x21b   :  { %2654 = vmatprep.subr.msk.mxu1 %vm62_vm0, %v3383_v50  ;;  %2675 = vmatprep.subr.msk.mxu0 %vm62_vm0, %v3383_v50  ;;  %v3398_v42 = vmul.f32 %v3224_v38, %v496_v51  ;;  %v3401_v57 = vmul.f32 %v3231_v44, %v496_v51  ;;  %v925_v38 = vmul.f32 %v3247_v56, %v3369_v43  ;;  %v3495_v43 = vld [vmem:[%s4025_s15 + $0x10] sm:$0xff] }
 0x21c   :  { %v924_v0 = vmul.f32 %v3247_v56, %v496_v51  ;;  %v729_v49 = vmul.f32 %v3245_v55, %v496_v51  ;;  %v3477_v56 = vld [vmem:[%s4025_s15 + $0x8] sm:$0xff] }
 0x21e   :  { %2655 = vmatpush3.xpose.msk.msra.mxu1 %vm62_vm0, %v3383_v50  ;;  %2676 = vmatpush3.xpose.msk.msra.mxu0 %vm62_vm0, %v3383_v50 }
 0x21f   :  { %2656 = vmatprep.subr.msk.mxu1 %vm62_vm0, %v3405_v58  ;;  %2677 = vmatprep.subr.msk.mxu0 %vm62_vm0, %v3405_v58 }
 0x222   :  { %2657 = vmatpush3.xpose.msk.msra.mxu1 %vm62_vm0, %v3405_v58  ;;  %2678 = vmatpush3.xpose.msk.msra.mxu0 %vm62_vm0, %v3405_v58 }
 0x223   :  { %2688 = vmatprep.subr.mxu1 %v925_v38  ;;  %2709 = vmatprep.subr.mxu0 %v730_v59 }
 0x225   :  { %2659 = vmatmul.mubr.msk.f32.vlgmr.msra.gmra.mxu1 %vm62_vm0, %v522_v48  ;;  %2680 = vmatmul.mubr.msk.f32.vlgmr.msra.gmra.mxu0 %vm62_vm0, %v736_v60  ;;  %v3504_v60 = vld [vmem:[%s4025_s15 + $0x28] sm:$0xff] }
 0x226   :  { %2661 = vmatprep.mubr.msk.f32.mxu1 %vm62_vm0, %v523_v61  ;;  %2682 = vmatprep.mubr.msk.f32.mxu0 %vm62_vm0, %v737_v62 }
 0x227   :  { %2689 = vmatpush3.msra.mxu1 %v925_v38  ;;  %2710 = vmatpush3.msra.mxu0 %v730_v59 }
 0x228   :  { %2690 = vmatprep.subr.mxu1 %v924_v0  ;;  %2711 = vmatprep.subr.mxu0 %v729_v49 }
 0x229   :  { %2691 = vmatpush3.msra.mxu1 %v924_v0  ;;  %2712 = vmatpush3.msra.mxu0 %v729_v49  ;;  %v3510_v0 = vld [vmem:[%s4025_s15 + $0x20] sm:$0xff] }
 0x22a   :  { %2662 = vmatmul.mubr.msk.f32.gmra.mxu1 %vm62_vm0, %v524_v1  ;;  %2683 = vmatmul.mubr.msk.f32.gmra.mxu0 %vm62_vm0, %v738_v2 }
 0x22b   :  { %2692 = vmatprep.subr.mxu1 %v923_v3  ;;  %2713 = vmatprep.subr.mxu0 %v728_v5 }
 0x22c   :  { %2664 = vmatprep.mubr.msk.f32.mxu1 %vm62_vm0, %v525_v6  ;;  %2685 = vmatprep.mubr.msk.f32.mxu0 %vm62_vm0, %v739_v9 }
 0x22d   :  { %2693 = vmatpush3.msra.mxu1 %v923_v3  ;;  %2714 = vmatpush3.msra.mxu0 %v728_v5 }
 0x22e   :  { %2694 = vmatprep.subr.mxu1 %v922_v63  ;;  %2715 = vmatprep.subr.mxu0 %v727_v10 }
 0x22f   :  { %2695 = vmatpush3.msra.mxu1 %v922_v63  ;;  %2716 = vmatpush3.msra.mxu0 %v727_v10 }
 0x230   :  { %2665 = vmatmul.mubr.msk.f32.gmra.mxu1 %vm62_vm0, %v526_v11  ;;  %2686 = vmatmul.mubr.msk.f32.gmra.mxu0 %vm62_vm0, %v740_v14 }
 0x231   :  { %2696 = vmatprep.subr.mxu1 %v921_v18  ;;  %2717 = vmatprep.subr.mxu0 %v726_v20 }
 0x232   :  { %2697 = vmatpush3.msra.mxu1 %v921_v18  ;;  %2718 = vmatpush3.msra.mxu0 %v726_v20 }
 0x233   :  { %2698 = vmatprep.subr.mxu1 %v920_v22  ;;  %2719 = vmatprep.subr.mxu0 %v725_v13 }
 0x234   :  { %2699 = vmatpush3.msra.mxu1 %v920_v22  ;;  %2720 = vmatpush3.msra.mxu0 %v725_v13 }
 0x235   :  { %2730 = vmatprep.subr.msk.mxu1 %vm62_vm0, %v3264_v7  ;;  %2751 = vmatprep.subr.mxu0 %v3469_v28 }
 0x2e5   :  { %v2681_v55 = vpop.f32.mrf.mxu0 }
 0x2e6   :  { %v831_v44 = vadd.f32 %v2681_v55, %v3477_v56 }
 0x2e7   :  { %v825_v27 = vpop.f32.mrf.mxu0 }
 0x2e8   :  { %v826_v30 = vadd.f32 %v825_v27, %v3482_v21  ;;  %v857_v37 = vsel %vm658_vm1, %v831_v44, -inf }
 0x2e9   :  { %858 = vmax.xlane.f32.xlu1 %v857_v37 }
 0x2ea   :  { %v2684_v40 = vpop.f32.mrf.mxu0  ;;  %v854_v45 = vsel %vm658_vm1, %v826_v30, -inf }
 0x2eb   :  { %v841_v51 = vadd.f32 %v2684_v40, %v3489_v31  ;;  %855 = vmax.xlane.f32.xlu0 %v854_v45 }
 0x2ec   :  { %v835_v38 = vpop.f32.mrf.mxu0 }
 0x2ed   :  { %v836_v59 = vadd.f32 %v835_v38, %v3495_v43  ;;  %v863_v48 = vsel %vm658_vm1, %v841_v51, -inf }
 0x2ee   :  { %864 = vmax.xlane.f32.xlu1 %v863_v48 }
 0x2ef   :  { %v860_v61 = vsel %vm658_vm1, %v836_v59, -inf }
 0x2f0   :  { %v2687_v62 = vpop.f32.mrf.mxu0  ;;  %861 = vmax.xlane.f32.xlu0 %v860_v61  ;;  %v2660_v61 = vpop.f32.mrf.mxu1 }
 0x2f1   :  { %v851_v49 = vadd.f32 %v2687_v62, %v3504_v60 }
 0x2f2   :  { %v845_v1 = vpop.f32.mrf.mxu0 }
 0x2f3   :  { %v846_v2 = vadd.f32 %v845_v1, %v3510_v0  ;;  %v869_v3 = vsel %vm658_vm1, %v851_v49, -inf  ;;  %v629_v1 = vpop.f32.mrf.mxu1 }
 0x2f4   :  { %870 = vmax.xlane.f32.xlu1 %v869_v3 }
 0x2f5   :  { %v866_v5 = vsel %vm658_vm1, %v846_v2, -inf }
 0x2f6   :  { %867 = vmax.xlane.f32.xlu0 %v866_v5 }
 0x372   :  { %v859_v6 = vpop.xlane.xlu1 %858 }
 0x373   :  { %v873_v9 = vsub.f32 %v831_v44, %v859_v6  ;;  %v2663_v6 = vpop.f32.mrf.mxu1 }
 0x374   :  { %v856_v63 = vpop.xlane.xlu0 %855 }
 0x375   :  { %v880_v10 = vmul.f32 1.442695, %v873_v9  ;;  %v872_v11 = vsub.f32 %v826_v30, %v856_v63  ;;  %v639_v63 = vpop.f32.mrf.mxu1 }
 0x377   :  { %2885 = vpow2.f32 %v880_v10  ;;  %v878_v14 = vmul.f32 1.442695, %v872_v11  ;;  %v865_v18 = vpop.xlane.xlu1 %864  ;;  %v3521_v10 = vadd.f32 %v2660_v61, %v3477_v56 }
 0x378   :  { %v875_v20 = vsub.f32 %v841_v51, %v865_v18  ;;  %v3525_v18 = vadd.f32 %v629_v1, %v3482_v21 }
 0x379   :  { %2887 = vpow2.f32 %v878_v14  ;;  %v862_v22 = vpop.xlane.xlu0 %861 }
 0x37a   :  { %v884_v13 = vmul.f32 1.442695, %v875_v20  ;;  %v874_v55 = vsub.f32 %v836_v59, %v862_v22  ;;  %v2666_v22 = vpop.f32.mrf.mxu1 }
 0x37c   :  { %2889 = vpow2.f32 %v884_v13  ;;  %v882_v27 = vmul.f32 1.442695, %v874_v55  ;;  %v3529_v13 = vadd.f32 %v2663_v6, %v3489_v31  ;;  %v662_v55 = vsel %vm658_vm1, %v3521_v10, -inf }
 0x37d   :  { %v871_v37 = vpop.xlane.xlu1 %870 }
 0x37e   :  { %2891 = vpow2.f32 %v882_v27  ;;  %v877_v40 = vsub.f32 %v851_v49, %v871_v37  ;;  %v3534_v27 = vadd.f32 %v639_v63, %v3495_v43  ;;  %v659_v37 = vsel %vm658_vm1, %v3525_v18, -inf }
 0x37f   :  { %v868_v45 = vpop.xlane.xlu0 %867 }
 0x380   :  { %v888_v38 = vmul.f32 1.442695, %v877_v40  ;;  %v876_v48 = vsub.f32 %v846_v2, %v868_v45  ;;  %v649_v40 = vpop.f32.mrf.mxu1  ;;  %v3539_v45 = vadd.f32 %v2666_v22, %v3504_v60 }
 0x382   :  { %2893 = vpow2.f32 %v888_v38  ;;  %v886_v44 = vmul.f32 1.442695, %v876_v48  ;;  %v668_v38 = vsel %vm658_vm1, %v3529_v13, -inf  ;;  %v3544_v48 = vadd.f32 %v649_v40, %v3510_v0 }
 0x383   :  { %v674_v61 = vsel %vm658_vm1, %v3539_v45, -inf }
 0x384   :  { %v2886_v30 = vpop.eup %2885  ;;  %2895 = vpow2.f32 %v886_v44  ;;  %v665_v44 = vsel %vm658_vm1, %v3534_v27, -inf }
 0x385   :  { %v893_v62 = vsel %vm658_vm1, %v2886_v30, 0.0 }
 0x386   :  { %v2888_v51 = vpop.eup %2887  ;;  %894 = vadd.xlane.f32.xlu1 %v893_v62  ;;  %v671_v62 = vsel %vm658_vm1, %v3544_v48, -inf }
 0x387   :  { %v890_v59 = vsel %vm658_vm1, %v2888_v51, 0.0 }
 0x388   :  { %891 = vadd.xlane.f32.xlu0 %v890_v59 }
 0x389   :  { %v2890_v3 = vpop.eup %2889 }
 0x38a   :  { %v899_v5 = vsel %vm658_vm1, %v2890_v3, 0.0 }
 0x38b   :  { %v2892_v49 = vpop.eup %2891  ;;  %900 = vadd.xlane.f32.xlu1 %v899_v5 }
 0x38c   :  { %v896_v2 = vsel %vm658_vm1, %v2892_v49, 0.0 }
 0x38d   :  { %897 = vadd.xlane.f32.xlu0 %v896_v2 }
 0x38f   :  { %v2894_v9 = vpop.eup %2893 }
 0x390   :  { %v905_v11 = vsel %vm658_vm1, %v2894_v9, 0.0 }
 0x391   :  { %v2896_v14 = vpop.eup %2895  ;;  %906 = vadd.xlane.f32.xlu1 %v905_v11 }
 0x392   :  { %v902_v20 = vsel %vm658_vm1, %v2896_v14, 0.0 }
 0x393   :  { %903 = vadd.xlane.f32.xlu0 %v902_v20 }
 0x395   :  { %663 = vmax.xlane.f32.xlu1 %v662_v55 }
 0x397   :  { %660 = vmax.xlane.f32.xlu0 %v659_v37 }
 0x399   :  { %669 = vmax.xlane.f32.xlu1 %v668_v38 }
 0x39b   :  { %666 = vmax.xlane.f32.xlu0 %v665_v44 }
 0x39d   :  { %675 = vmax.xlane.f32.xlu1 %v674_v61 }
 0x39f   :  { %672 = vmax.xlane.f32.xlu0 %v671_v62 }
 0x40f   :  { %v895_v1 = vpop.xlane.xlu1 %894 }
 0x410   :  { %2897 = vrcp.f32 %v895_v1 }
 0x411   :  { %v892_v59 = vpop.xlane.xlu0 %891 }
 0x412   :  { %2899 = vrcp.f32 %v892_v59 }
 0x414   :  { %v901_v5 = vpop.xlane.xlu1 %900 }
 0x415   :  { %2901 = vrcp.f32 %v901_v5 }
 0x416   :  { %v898_v6 = vpop.xlane.xlu0 %897 }
 0x417   :  { %2903 = vrcp.f32 %v898_v6 }
 0x41a   :  { %v907_v2 = vpop.xlane.xlu1 %906 }
 0x41b   :  { %2905 = vrcp.f32 %v907_v2 }
 0x41c   :  { %v904_v63 = vpop.xlane.xlu0 %903 }
 0x41d   :  { %2907 = vrcp.f32 %v904_v63  ;;  %v2898_v11 = vpop.eup %2897 }
 0x41e   :  { %v915_v55 = vmul.f32 %v2898_v11, %v2886_v30 }
 0x41f   :  { %v2900_v20 = vpop.eup %2899 }
 0x420   :  { %v914_v22 = vmul.f32 %v2900_v20, %v2888_v51 }
 0x422   :  { %2700 = vmatprep.mubr.msk.f32.mxu1 %vm658_vm1, %v914_v22  ;;  %v2902_v37 = vpop.eup %2901 }
 0x423   :  { %2701 = vmatmul.mubr.msk.f32.vlgmr.msra.gmra.mxu1 %vm658_vm1, %v915_v55  ;;  %v917_v44 = vmul.f32 %v2902_v37, %v2890_v3 }
 0x424   :  { %v2904_v40 = vpop.eup %2903  ;;  %2731 = vmatpush3.xpose.msk.msra.mxu1 %vm62_vm0, %v3264_v7 }
 0x425   :  { %2732 = vmatprep.subr.msk.mxu1 %vm62_vm0, %v3281_v15  ;;  %v916_v38 = vmul.f32 %v2904_v40, %v2892_v49 }
 0x427   :  { %2703 = vmatprep.mubr.msk.f32.mxu1 %vm658_vm1, %v916_v38 }
 0x428   :  { %2704 = vmatmul.mubr.msk.f32.gmra.mxu1 %vm658_vm1, %v917_v44  ;;  %v2906_v51 = vpop.eup %2905 }
 0x429   :  { %2733 = vmatpush3.xpose.msk.msra.mxu1 %vm62_vm0, %v3281_v15  ;;  %v919_v62 = vmul.f32 %v2906_v51, %v2894_v9 }
 0x42a   :  { %v2908_v30 = vpop.eup %2907  ;;  %2734 = vmatprep.subr.msk.mxu1 %vm62_vm0, %v3320_v26 }
 0x42b   :  { %v918_v61 = vmul.f32 %v2908_v30, %v2896_v14 }
 0x42d   :  { %2706 = vmatprep.mubr.msk.f32.mxu1 %vm658_vm1, %v918_v61  ;;  %2735 = vmatpush3.xpose.msk.msra.mxu1 %vm62_vm0, %v3320_v26 }
 0x42e   :  { %2707 = vmatmul.mubr.msk.f32.gmra.mxu1 %vm658_vm1, %v919_v62  ;;  %2736 = vmatprep.subr.msk.mxu1 %vm62_vm0, %v3357_v36 }
 0x42f   :  { %2742 = vmatprep.mubr.msk.f32.mxu1 %vm62_vm0, %v3259_v4 }
 0x431   :  { %2737 = vmatpush3.xpose.msk.msra.mxu1 %vm62_vm0, %v3357_v36 }
 0x432   :  { %2738 = vmatprep.subr.msk.mxu1 %vm62_vm0, %v3383_v50 }
 0x435   :  { %2739 = vmatpush3.xpose.msk.msra.mxu1 %vm62_vm0, %v3383_v50 }
 0x436   :  { %2740 = vmatprep.subr.msk.mxu1 %vm62_vm0, %v3405_v58 }
 0x439   :  { %2741 = vmatpush3.xpose.msk.msra.mxu1 %vm62_vm0, %v3405_v58 }
 0x43a   :  { %2793 = vmatprep.subr.mxu1 %v3391_v52 }
 0x43c   :  { %2743 = vmatmul.mubr.msk.f32.vlgmr.msra.gmra.mxu1 %vm62_vm0, %v3239_v53 }
 0x43d   :  { %2745 = vmatprep.mubr.msk.f32.mxu1 %vm62_vm0, %v3293_v19  ;;  %2794 = vmatpush3.msra.mxu1 %v3391_v52  ;;  %v661_v19 = vpop.xlane.xlu0 %660 }
 0x43e   :  { %2795 = vmatprep.subr.mxu1 %v3398_v42 }
 0x43f   :  { %2796 = vmatpush3.msra.mxu1 %v3398_v42 }
 0x440   :  { %2746 = vmatmul.mubr.msk.f32.gmra.mxu1 %vm62_vm0, %v3276_v12  ;;  %2797 = vmatprep.subr.mxu1 %v3360_v39  ;;  %v664_v12 = vpop.xlane.xlu1 %663 }
 0x441   :  { %2748 = vmatprep.mubr.msk.f32.mxu1 %vm62_vm0, %v3330_v25  ;;  %2798 = vmatpush3.msra.mxu1 %v3360_v39  ;;  %v667_v52 = vpop.xlane.xlu0 %666 }
 0x442   :  { %2799 = vmatprep.subr.mxu1 %v3376_v46  ;;  %v679_v14 = vsub.f32 %v3534_v27, %v667_v52 }
 0x443   :  { %2800 = vmatpush3.msra.mxu1 %v3376_v46 }
 0x444   :  { %2749 = vmatmul.mubr.msk.f32.gmra.mxu1 %vm62_vm0, %v3309_v23  ;;  %2801 = vmatprep.subr.mxu1 %v3334_v29  ;;  %v670_v39 = vpop.xlane.xlu1 %669  ;;  %v678_v23 = vsub.f32 %v3521_v10, %v664_v12  ;;  %v687_v2 = vmul.f32 1.442695, %v679_v14 }
 0x445   :  { %2802 = vmatpush3.msra.mxu1 %v3334_v29  ;;  %v677_v29 = vsub.f32 %v3525_v18, %v661_v19  ;;  %v673_v1 = vpop.xlane.xlu0 %672 }
 0x446   :  { %2803 = vmatprep.subr.mxu1 %v3342_v32  ;;  %v685_v3 = vmul.f32 1.442695, %v678_v23  ;;  %v681_v18 = vsub.f32 %v3544_v48, %v673_v1 }
 0x447   :  { %2804 = vmatpush3.msra.mxu1 %v3342_v32  ;;  %v680_v32 = vsub.f32 %v3529_v13, %v670_v39  ;;  %v683_v9 = vmul.f32 1.442695, %v677_v29 }
 0x448   :  { %v676_v49 = vpop.xlane.xlu1 %675  ;;  %2909 = vpow2.f32 %v685_v3  ;;  %v691_v55 = vmul.f32 1.442695, %v681_v18 }
 0x449   :  { %v689_v5 = vmul.f32 1.442695, %v680_v32  ;;  %v682_v6 = vsub.f32 %v3539_v45, %v676_v49  ;;  %2911 = vpow2.f32 %v683_v9 }
 0x44b   :  { %2913 = vpow2.f32 %v689_v5  ;;  %v693_v13 = vmul.f32 1.442695, %v682_v6 }
 0x44c   :  { %2915 = vpow2.f32 %v687_v2 }
 0x44d   :  { %2917 = vpow2.f32 %v693_v13 }
 0x44e   :  { %2919 = vpow2.f32 %v691_v55 }
 0x455   :  { %v3633_v19 = vpop.eup %2909 }
 0x456   :  { %v3636_v23 = vpop.eup %2911  ;;  %v698_v52 = vsel %vm658_vm1, %v3633_v19, 0.0 }
 0x457   :  { %v695_v3 = vsel %vm658_vm1, %v3636_v23, 0.0 }
 0x458   :  { %v3640_v29 = vpop.eup %2913 }
 0x459   :  { %v3644_v32 = vpop.eup %2915  ;;  %v704_v49 = vsel %vm658_vm1, %v3640_v29, 0.0 }
 0x45a   :  { %v3648_v9 = vpop.eup %2917  ;;  %v701_v14 = vsel %vm658_vm1, %v3644_v32, 0.0 }
 0x45b   :  { %v3652_v1 = vpop.eup %2919  ;;  %v710_v5 = vsel %vm658_vm1, %v3648_v9, 0.0 }
 0x45c   :  { %v707_v6 = vsel %vm658_vm1, %v3652_v1, 0.0 }
 0x4e3   :  { %v3604_v53 = vpop.f32.mrf.mxu1 }
 0x4e5   :  { %v3606_v4 = vpop.f32.mrf.mxu1 }
 0x4e8   :  { %v3608_v25 = vpop.f32.mrf.mxu1 }
 0x4ea   :  { %v3610_v46 = vpop.f32.mrf.mxu1 }
 0x4ee   :  { %v3614_v42 = vpop.f32.mrf.mxu1 }
 0x4f0   :  { %v3618_v59 = vpop.f32.mrf.mxu1 }
 0x4fc   :  { %v2744_v10 = vpop.f32.mrf.mxu1 }
 0x4fd   :  { %v1252_v63 = vadd.f32 %v2744_v10, %v3477_v56 }
 0x4fe   :  { %v1246_v11 = vpop.f32.mrf.mxu1 }
 0x4ff   :  { %v1247_v20 = vadd.f32 %v1246_v11, %v3482_v21  ;;  %v1278_v27 = vsel %vm658_vm1, %v1252_v63, -inf }
 0x500   :  { %1279 = vmax.xlane.f32.xlu1 %v1278_v27  ;;  %v2747_v22 = vpop.f32.mrf.mxu1 }
 0x501   :  { %v1262_v45 = vadd.f32 %v2747_v22, %v3489_v31  ;;  %v1275_v37 = vsel %vm658_vm1, %v1247_v20, -inf }
 0x502   :  { %v1256_v40 = vpop.f32.mrf.mxu1  ;;  %1276 = vmax.xlane.f32.xlu0 %v1275_v37 }
 0x503   :  { %v1257_v48 = vadd.f32 %v1256_v40, %v3495_v43  ;;  %v1284_v38 = vsel %vm658_vm1, %v1262_v45, -inf }
 0x504   :  { %1285 = vmax.xlane.f32.xlu1 %v1284_v38  ;;  %v2750_v44 = vpop.f32.mrf.mxu1 }
 0x505   :  { %v1272_v51 = vadd.f32 %v2750_v44, %v3504_v60  ;;  %v1281_v30 = vsel %vm658_vm1, %v1257_v48, -inf }
 0x506   :  { %v1266_v61 = vpop.f32.mrf.mxu1  ;;  %1282 = vmax.xlane.f32.xlu0 %v1281_v30 }
 0x507   :  { %v1267_v62 = vadd.f32 %v1266_v61, %v3510_v0  ;;  %v1290_v12 = vsel %vm658_vm1, %v1272_v51, -inf }
 0x508   :  { %1291 = vmax.xlane.f32.xlu1 %v1290_v12 }
 0x509   :  { %v1287_v39 = vsel %vm658_vm1, %v1267_v62, -inf }
 0x50a   :  { %1288 = vmax.xlane.f32.xlu0 %v1287_v39 }
 0x50c   :  { %699 = vadd.xlane.f32.xlu1 %v698_v52 }
 0x50e   :  { %696 = vadd.xlane.f32.xlu0 %v695_v3 }
 0x510   :  { %705 = vadd.xlane.f32.xlu1 %v704_v49 }
 0x512   :  { %702 = vadd.xlane.f32.xlu0 %v701_v14 }
 0x514   :  { %711 = vadd.xlane.f32.xlu1 %v710_v5 }
 0x516   :  { %708 = vadd.xlane.f32.xlu0 %v707_v6 }
 0x589   :  { %v1280_v10 = vpop.xlane.xlu1 %1279 }
 0x58a   :  { %v1294_v2 = vsub.f32 %v1252_v63, %v1280_v10 }
 0x58b   :  { %v1277_v18 = vpop.xlane.xlu0 %1276 }
 0x58c   :  { %v1301_v11 = vmul.f32 1.442695, %v1294_v2  ;;  %v1293_v13 = vsub.f32 %v1247_v20, %v1277_v18 }
 0x58d   :  { %v1286_v27 = vpop.xlane.xlu1 %1285 }
 0x58e   :  { %2921 = vpow2.f32 %v1301_v11  ;;  %v1299_v22 = vmul.f32 1.442695, %v1293_v13  ;;  %v1296_v55 = vsub.f32 %v1262_v45, %v1286_v27 }
 0x58f   :  { %v1283_v37 = vpop.xlane.xlu0 %1282 }
 0x590   :  { %2923 = vpow2.f32 %v1299_v22  ;;  %v1305_v40 = vmul.f32 1.442695, %v1296_v55  ;;  %v1295_v38 = vsub.f32 %v1257_v48, %v1283_v37 }
 0x591   :  { %v1292_v44 = vpop.xlane.xlu1 %1291 }
 0x592   :  { %2925 = vpow2.f32 %v1305_v40  ;;  %v1303_v30 = vmul.f32 1.442695, %v1295_v38  ;;  %v1298_v61 = vsub.f32 %v1272_v51, %v1292_v44 }
 0x593   :  { %v1289_v12 = vpop.xlane.xlu0 %1288 }
 0x594   :  { %2927 = vpow2.f32 %v1303_v30  ;;  %v1309_v39 = vmul.f32 1.442695, %v1298_v61  ;;  %v1297_v52 = vsub.f32 %v1267_v62, %v1289_v12 }
 0x595   :  { %v700_v63 = vpop.xlane.xlu1 %699 }
 0x596   :  { %2929 = vpow2.f32 %v1309_v39  ;;  %v1307_v3 = vmul.f32 1.442695, %v1297_v52 }
 0x597   :  { %2931 = vrcp.f32 %v700_v63  ;;  %v697_v20 = vpop.xlane.xlu0 %696 }
 0x598   :  { %2933 = vpow2.f32 %v1307_v3 }
 0x599   :  { %2935 = vrcp.f32 %v697_v20  ;;  %v706_v45 = vpop.xlane.xlu1 %705 }
 0x59a   :  { %2937 = vrcp.f32 %v706_v45 }
 0x59b   :  { %v3658_v49 = vpop.eup %2921  ;;  %v703_v48 = vpop.xlane.xlu0 %702 }
 0x59c   :  { %2939 = vrcp.f32 %v703_v48  ;;  %v1314_v51 = vsel %vm658_vm1, %v3658_v49, 0.0 }
 0x59d   :  { %v3662_v14 = vpop.eup %2923  ;;  %1315 = vadd.xlane.f32.xlu1 %v1314_v51  ;;  %v712_v62 = vpop.xlane.xlu1 %711 }
 0x59e   :  { %v1311_v5 = vsel %vm658_vm1, %v3662_v14, 0.0  ;;  %2941 = vrcp.f32 %v712_v62 }
 0x59f   :  { %v3666_v6 = vpop.eup %2925  ;;  %1312 = vadd.xlane.f32.xlu0 %v1311_v5  ;;  %v709_v10 = vpop.xlane.xlu0 %708 }
 0x5a0   :  { %2943 = vrcp.f32 %v709_v10  ;;  %v1320_v2 = vsel %vm658_vm1, %v3666_v6, 0.0 }
 0x5a1   :  { %v2928_v18 = vpop.eup %2927  ;;  %1321 = vadd.xlane.f32.xlu1 %v1320_v2 }
 0x5a2   :  { %v1317_v11 = vsel %vm658_vm1, %v2928_v18, 0.0 }
 0x5a3   :  { %v3671_v13 = vpop.eup %2929  ;;  %1318 = vadd.xlane.f32.xlu0 %v1317_v11 }
 0x5a4   :  { %v2932_v27 = vpop.eup %2931  ;;  %v1326_v22 = vsel %vm658_vm1, %v3671_v13, 0.0 }
 0x5a5   :  { %v2934_v55 = vpop.eup %2933  ;;  %1327 = vadd.xlane.f32.xlu1 %v1326_v22  ;;  %v720_v30 = vmul.f32 %v2932_v27, %v3633_v19 }
 0x5a6   :  { %v2936_v37 = vpop.eup %2935  ;;  %v1323_v40 = vsel %vm658_vm1, %v2934_v55, 0.0 }
 0x5a7   :  { %1324 = vadd.xlane.f32.xlu0 %v1323_v40  ;;  %v719_v38 = vmul.f32 %v2936_v37, %v3636_v23  ;;  %v2938_v44 = vpop.eup %2937 }
 0x5a8   :  { %v722_v52 = vmul.f32 %v2938_v44, %v3640_v29 }
 0x5a9   :  { %v2940_v61 = vpop.eup %2939  ;;  %2721 = vmatprep.mubr.msk.f32.mxu0 %vm658_vm1, %v719_v38 }
 0x5aa   :  { %2722 = vmatmul.mubr.msk.f32.vlgmr.msra.gmra.mxu0 %vm658_vm1, %v720_v30  ;;  %v721_v12 = vmul.f32 %v2940_v61, %v3644_v32 }
 0x5ab   :  { %2752 = vmatpush3.msra.mxu0 %v3469_v28  ;;  %v2942_v39 = vpop.eup %2941 }
 0x5ac   :  { %2753 = vmatprep.subr.mxu0 %v3401_v57  ;;  %2724 = vmatprep.mubr.msk.f32.mxu0 %vm658_vm1, %v721_v12  ;;  %v724_v28 = vmul.f32 %v2942_v39, %v3648_v9 }
 0x5ad   :  { %v2944_v23 = vpop.eup %2943  ;;  %2754 = vmatpush3.msra.mxu0 %v3401_v57 }
 0x5ae   :  { %2755 = vmatprep.subr.mxu0 %v3367_v41  ;;  %2725 = vmatmul.mubr.msk.f32.gmra.mxu0 %vm658_vm1, %v722_v52  ;;  %v723_v19 = vmul.f32 %v2944_v23, %v3652_v1 }
 0x5af   :  { %2756 = vmatpush3.msra.mxu0 %v3367_v41 }
 0x5b0   :  { %2757 = vmatprep.subr.mxu0 %v3379_v47  ;;  %2727 = vmatprep.mubr.msk.f32.mxu0 %vm658_vm1, %v723_v19 }
 0x5b1   :  { %2758 = vmatpush3.msra.mxu0 %v3379_v47 }
 0x5b2   :  { %2759 = vmatprep.subr.mxu0 %v3346_v33  ;;  %2728 = vmatmul.mubr.msk.f32.gmra.mxu0 %vm658_vm1, %v724_v28 }
 0x5b3   :  { %2760 = vmatpush3.msra.mxu0 %v3346_v33 }
 0x5b4   :  { %2761 = vmatprep.subr.mxu0 %v3350_v34 }
 0x5b5   :  { %2762 = vmatpush3.msra.mxu0 %v3350_v34 }
 0x5b6   :  { %2772 = vmatprep.subr.msk.mxu0 %vm62_vm0, %v3264_v7 }
 0x626   :  { %v1316_v41 = vpop.xlane.xlu1 %1315 }
 0x627   :  { %2945 = vrcp.f32 %v1316_v41 }
 0x628   :  { %v1313_v57 = vpop.xlane.xlu0 %1312 }
 0x629   :  { %2947 = vrcp.f32 %v1313_v57 }
 0x62a   :  { %v1322_v29 = vpop.xlane.xlu1 %1321 }
 0x62b   :  { %2949 = vrcp.f32 %v1322_v29 }
 0x62c   :  { %v1319_v47 = vpop.xlane.xlu0 %1318 }
 0x62d   :  { %2951 = vrcp.f32 %v1319_v47 }
 0x62e   :  { %v1328_v32 = vpop.xlane.xlu1 %1327 }
 0x62f   :  { %2953 = vrcp.f32 %v1328_v32 }
 0x630   :  { %v1325_v9 = vpop.xlane.xlu0 %1324 }
 0x631   :  { %2955 = vrcp.f32 %v1325_v9 }
 0x634   :  { %v2946_v33 = vpop.eup %2945 }
 0x635   :  { %v1336_v34 = vmul.f32 %v2946_v33, %v3658_v49 }
 0x636   :  { %v2948_v1 = vpop.eup %2947 }
 0x637   :  { %v1335_v63 = vmul.f32 %v2948_v1, %v3662_v14 }
 0x638   :  { %v2950_v3 = vpop.eup %2949 }
 0x639   :  { %2763 = vmatprep.mubr.msk.f32.mxu0 %vm658_vm1, %v1335_v63  ;;  %v1338_v48 = vmul.f32 %v2950_v3, %v3666_v6 }
 0x63a   :  { %v2952_v20 = vpop.eup %2951  ;;  %2764 = vmatmul.mubr.msk.f32.vlgmr.msra.gmra.mxu0 %vm658_vm1, %v1336_v34 }
 0x63b   :  { %2773 = vmatpush3.xpose.msk.msra.mxu0 %vm62_vm0, %v3264_v7  ;;  %v1337_v45 = vmul.f32 %v2952_v20, %v2928_v18 }
 0x63c   :  { %2774 = vmatprep.subr.msk.mxu0 %vm62_vm0, %v3281_v15  ;;  %v2954_v51 = vpop.eup %2953 }
 0x63d   :  { %2766 = vmatprep.mubr.msk.f32.mxu0 %vm658_vm1, %v1337_v45  ;;  %v1340_v7 = vmul.f32 %v2954_v51, %v3671_v13 }
 0x63e   :  { %v2956_v14 = vpop.eup %2955  ;;  %2767 = vmatmul.mubr.msk.f32.gmra.mxu0 %vm658_vm1, %v1338_v48 }
 0x63f   :  { %2775 = vmatpush3.xpose.msk.msra.mxu0 %vm62_vm0, %v3281_v15  ;;  %v1339_v49 = vmul.f32 %v2956_v14, %v2934_v55 }
 0x640   :  { %2776 = vmatprep.subr.msk.mxu0 %vm62_vm0, %v3320_v26 }
 0x641   :  { %2769 = vmatprep.mubr.msk.f32.mxu0 %vm658_vm1, %v1339_v49 }
 0x642   :  { %2770 = vmatmul.mubr.msk.f32.gmra.mxu0 %vm658_vm1, %v1340_v7 }
 0x643   :  { %2777 = vmatpush3.xpose.msk.msra.mxu0 %vm62_vm0, %v3320_v26  ;;  %2784 = vmatprep.mubr.msk.f32.mxu0 %vm62_vm0, %v3267_v8 }
 0x644   :  { %2778 = vmatprep.subr.msk.mxu0 %vm62_vm0, %v3357_v36 }
 0x647   :  { %2779 = vmatpush3.xpose.msk.msra.mxu0 %vm62_vm0, %v3357_v36 }
 0x648   :  { %2780 = vmatprep.subr.msk.mxu0 %vm62_vm0, %v3383_v50 }
 0x64b   :  { %2781 = vmatpush3.xpose.msk.msra.mxu0 %vm62_vm0, %v3383_v50 }
 0x64c   :  { %2782 = vmatprep.subr.msk.mxu0 %vm62_vm0, %v3405_v58 }
 0x64f   :  { %2783 = vmatpush3.xpose.msk.msra.mxu0 %vm62_vm0, %v3405_v58 }
 0x652   :  { %2785 = vmatmul.mubr.msk.f32.vlgmr.msra.gmra.mxu0 %vm62_vm0, %v3243_v54 }
 0x653   :  { %2787 = vmatprep.mubr.msk.f32.mxu0 %vm62_vm0, %v3297_v16 }
 0x656   :  { %2788 = vmatmul.mubr.msk.f32.gmra.mxu0 %vm62_vm0, %v3313_v24 }
 0x657   :  { %2790 = vmatprep.mubr.msk.f32.mxu0 %vm62_vm0, %v3354_v35 }
 0x65a   :  { %2791 = vmatmul.mubr.msk.f32.gmra.mxu0 %vm62_vm0, %v3317_v17 }
 0x66a   :  { %v2723_v8 = vpop.f32.mrf.mxu0 }
 0x66b   :  { %v1129_v54 = vadd.f32 %v2723_v8, %v3604_v53 }
 0x66c   :  { %v1123_v15 = vpop.f32.mrf.mxu0 }
 0x66d   :  { %v1124_v16 = vadd.f32 %v1123_v15, %v3606_v4 }
 0x66e   :  { %v2726_v26 = vpop.f32.mrf.mxu0 }
 0x66f   :  { %v1139_v35 = vadd.f32 %v2726_v26, %v3608_v25 }
 0x670   :  { %v1133_v36 = vpop.f32.mrf.mxu0 }
 0x671   :  { %v1134_v10 = vadd.f32 %v1133_v36, %v3610_v46 }
 0x672   :  { %v2729_v50 = vpop.f32.mrf.mxu0 }
 0x673   :  { %v1149_v11 = vadd.f32 %v2729_v50, %v3614_v42 }
 0x674   :  { %v3745_v58 = vpop.f32.mrf.mxu0 }
 0x6fa   :  { %v2765_v62 = vpop.f32.mrf.mxu0 }
 0x6fb   :  { %v3749_v5 = vadd.f32 %v2765_v62, %v1129_v54 }
 0x6fc   :  { %v1431_v24 = vpop.f32.mrf.mxu0 }
 0x6fd   :  { %v3752_v6 = vadd.f32 %v1431_v24, %v1124_v16  ;;  %v1783_v16 = vld [vmem:[%s4026_s9 + $0x18] sm:$0xff] }
 0x6fe   :  { %v2768_v17 = vpop.f32.mrf.mxu0  ;;  %2814 = vmatprep.subr.mxu1 %v1783_v16 }
 0x6ff   :  { %v3755_v2 = vadd.f32 %v2768_v17, %v1139_v35 }
 0x700   :  { %v1441_v18 = vpop.f32.mrf.mxu0 }
 0x701   :  { %v3758_v13 = vadd.f32 %v1441_v18, %v1134_v10 }
 0x702   :  { %v2771_v53 = vpop.f32.mrf.mxu0 }
 0x703   :  { %v3760_v27 = vadd.f32 %v2771_v53, %v1149_v11 }
 0x704   :  { %v3762_v4 = vpop.f32.mrf.mxu0 }
 0x712   :  { %v2786_v22 = vpop.f32.mrf.mxu0 }
 0x713   :  { %v1566_v25 = vadd.f32 %v2786_v22, %v3477_v56 }
 0x714   :  { %v1560_v55 = vpop.f32.mrf.mxu0 }
 0x715   :  { %v1561_v37 = vadd.f32 %v1560_v55, %v3482_v21  ;;  %v1592_v46 = vsel %vm658_vm1, %v1566_v25, -inf }
 0x716   :  { %1593 = vmax.xlane.f32.xlu1 %v1592_v46  ;;  %v2789_v40 = vpop.f32.mrf.mxu0  ;;  %v1782_v46 = vld [vmem:[%s4026_s9 + $0x10] sm:$0xff] }
 0x717   :  { %v1576_v38 = vadd.f32 %v2789_v40, %v3489_v31  ;;  %v1589_v42 = vsel %vm658_vm1, %v1561_v37, -inf }
 0x718   :  { %v1570_v44 = vpop.f32.mrf.mxu0  ;;  %1590 = vmax.xlane.f32.xlu0 %v1589_v42  ;;  %v1781_v42 = vld [vmem:[%s4026_s9 + $0x8] sm:$0xff] }
 0x719   :  { %v1571_v30 = vadd.f32 %v1570_v44, %v3495_v43  ;;  %v1598_v61 = vsel %vm658_vm1, %v1576_v38, -inf }
 0x71a   :  { %1599 = vmax.xlane.f32.xlu1 %v1598_v61  ;;  %v2792_v12 = vpop.f32.mrf.mxu0 }
 0x71b   :  { %v1586_v56 = vadd.f32 %v2792_v12, %v3504_v60  ;;  %v1595_v21 = vsel %vm658_vm1, %v1571_v30, -inf }
 0x71c   :  { %v1580_v39 = vpop.f32.mrf.mxu0  ;;  %1596 = vmax.xlane.f32.xlu0 %v1595_v21  ;;  %v1780_v21 = vld [vmem:[%s4026_s9] sm:$0xff] }
 0x71d   :  { %v1581_v52 = vadd.f32 %v1580_v39, %v3510_v0  ;;  %v1604_v31 = vsel %vm658_vm1, %v1586_v56, -inf }
 0x71e   :  { %1605 = vmax.xlane.f32.xlu1 %v1604_v31 }
 0x71f   :  { %v1601_v23 = vsel %vm658_vm1, %v1581_v52, -inf }
 0x720   :  { %1602 = vmax.xlane.f32.xlu0 %v1601_v23 }
 0x79f   :  { %v1594_v19 = vpop.xlane.xlu1 %1593 }
 0x7a0   :  { %v1608_v43 = vsub.f32 %v1566_v25, %v1594_v19 }
 0x7a1   :  { %v1591_v28 = vpop.xlane.xlu0 %1590 }
 0x7a2   :  { %v1615_v41 = vmul.f32 1.442695, %v1608_v43  ;;  %v1607_v57 = vsub.f32 %v1561_v37, %v1591_v28  ;;  %v1144_v28 = vadd.f32 %v3745_v58, %v3618_v59  ;;  %v2416_v59 = vld [vmem:[%s4027_s10] ss:$0 sm:$0xff] }
 0x7a3   :  { %v1600_v29 = vpop.xlane.xlu1 %1599 }
 0x7a4   :  { %2957 = vpow2.f32 %v1615_v41  ;;  %v1613_v60 = vmul.f32 1.442695, %v1607_v57  ;;  %v1610_v47 = vsub.f32 %v1576_v38, %v1600_v29 }
 0x7a5   :  { %v1597_v32 = vpop.xlane.xlu0 %1596 }
 0x7a6   :  { %2959 = vpow2.f32 %v1613_v60  ;;  %v1619_v9 = vmul.f32 1.442695, %v1610_v47  ;;  %v1609_v33 = vsub.f32 %v1571_v30, %v1597_v32  ;;  %v1464_v60 = vadd.f32 %v3762_v4, %v1144_v28  ;;  %v3005_v4 = vld [vmem:[%s4037_s26 + $0x8] sm:$0xff] }
 0x7a7   :  { %v1606_v0 = vpop.xlane.xlu1 %1605 }
 0x7a8   :  { %2961 = vpow2.f32 %v1619_v9  ;;  %v1617_v1 = vmul.f32 1.442695, %v1609_v33  ;;  %v1612_v63 = vsub.f32 %v1586_v56, %v1606_v0 }
 0x7a9   :  { %v1603_v34 = vpop.xlane.xlu0 %1602 }
 0x7aa   :  { %2963 = vpow2.f32 %v1617_v1  ;;  %v1623_v3 = vmul.f32 1.442695, %v1612_v63  ;;  %v1611_v20 = vsub.f32 %v1581_v52, %v1603_v34 }
 0x7ac   :  { %2965 = vpow2.f32 %v1623_v3  ;;  %v1621_v45 = vmul.f32 1.442695, %v1611_v20  ;;  %v3007_v3 = vld [vmem:[%s4037_s26 + $0x18] sm:$0xff] }
 0x7ae   :  { %2967 = vpow2.f32 %v1621_v45 }
 0x7b1   :  { %v2958_v48 = vpop.eup %2957 }
 0x7b2   :  { %v1628_v51 = vsel %vm658_vm1, %v2958_v48, 0.0 }
 0x7b3   :  { %v2960_v14 = vpop.eup %2959  ;;  %1629 = vadd.xlane.f32.xlu1 %v1628_v51 }
 0x7b4   :  { %v1625_v49 = vsel %vm658_vm1, %v2960_v14, 0.0 }
 0x7b5   :  { %v2962_v7 = vpop.eup %2961  ;;  %1626 = vadd.xlane.f32.xlu0 %v1625_v49 }
 0x7b6   :  { %v1634_v8 = vsel %vm658_vm1, %v2962_v7, 0.0 }
 0x7b7   :  { %v2964_v15 = vpop.eup %2963  ;;  %1635 = vadd.xlane.f32.xlu1 %v1634_v8 }
 0x7b8   :  { %v1631_v26 = vsel %vm658_vm1, %v2964_v15, 0.0 }
 0x7b9   :  { %v2966_v36 = vpop.eup %2965  ;;  %1632 = vadd.xlane.f32.xlu0 %v1631_v26  ;;  %v3009_v26 = vld [vmem:[%s4037_s26 + $0x28] sm:$0xff] }
 0x7ba   :  { %v1640_v50 = vsel %vm658_vm1, %v2966_v36, 0.0 }
 0x7bb   :  { %v2968_v54 = vpop.eup %2967  ;;  %1641 = vadd.xlane.f32.xlu1 %v1640_v50 }
 0x7bc   :  { %v1637_v62 = vsel %vm658_vm1, %v2968_v54, 0.0 }
 0x7bd   :  { %1638 = vadd.xlane.f32.xlu0 %v1637_v62  ;;  %v3010_v62 = vld [vmem:[%s4037_s26 + $0x20] sm:$0xff] }
 0x83c   :  { %v1630_v24 = vpop.xlane.xlu1 %1629 }
 0x83d   :  { %2969 = vrcp.f32 %v1630_v24 }
 0x83e   :  { %v1627_v35 = vpop.xlane.xlu0 %1626 }
 0x83f   :  { %2971 = vrcp.f32 %v1627_v35 }
 0x840   :  { %v1636_v17 = vpop.xlane.xlu1 %1635 }
 0x841   :  { %2973 = vrcp.f32 %v1636_v17 }
 0x842   :  { %v1633_v10 = vpop.xlane.xlu0 %1632 }
 0x843   :  { %2975 = vrcp.f32 %v1633_v10 }
 0x844   :  { %v1642_v18 = vpop.xlane.xlu1 %1641 }
 0x845   :  { %2977 = vrcp.f32 %v1642_v18 }
 0x846   :  { %v1639_v11 = vpop.xlane.xlu0 %1638 }
 0x847   :  { %2979 = vrcp.f32 %v1639_v11 }
 0x84a   :  { %v2970_v53 = vpop.eup %2969 }
 0x84b   :  { %v1650_v55 = vmul.f32 %v2970_v53, %v2958_v48 }
 0x84c   :  { %v2972_v22 = vpop.eup %2971 }
 0x84d   :  { %v1649_v25 = vmul.f32 %v2972_v22, %v2960_v14  ;;  %v3008_v14 = vld [vmem:[%s4037_s26 + $0x10] sm:$0xff] }
 0x84e   :  { %v2974_v37 = vpop.eup %2973 }
 0x84f   :  { %2805 = vmatprep.mubr.msk.f32.mxu1 %vm658_vm1, %v1649_v25  ;;  %v1652_v44 = vmul.f32 %v2974_v37, %v2962_v7 }
 0x850   :  { %v2976_v40 = vpop.eup %2975  ;;  %2806 = vmatmul.mubr.msk.f32.vlgmr.msra.gmra.mxu1 %vm658_vm1, %v1650_v55 }
 0x851   :  { %v1651_v38 = vmul.f32 %v2976_v40, %v2964_v15  ;;  %2815 = vmatpush3.msra.mxu1 %v1783_v16 }
 0x852   :  { %2816 = vmatprep.subr.mxu1 %v1782_v46  ;;  %v2978_v30 = vpop.eup %2977 }
 0x853   :  { %2808 = vmatprep.mubr.msk.f32.mxu1 %vm658_vm1, %v1651_v38  ;;  %2817 = vmatpush3.msra.mxu1 %v1782_v46  ;;  %v1654_v56 = vmul.f32 %v2978_v30, %v2966_v36 }
 0x854   :  { %v2980_v61 = vpop.eup %2979  ;;  %2809 = vmatmul.mubr.msk.f32.gmra.mxu1 %vm658_vm1, %v1652_v44  ;;  %2818 = vmatprep.subr.mxu1 %v1781_v42 }
 0x855   :  { %v1653_v12 = vmul.f32 %v2980_v61, %v2968_v54  ;;  %2819 = vmatpush3.msra.mxu1 %v1781_v42 }
 0x856   :  { %2820 = vmatprep.subr.mxu1 %v1780_v21 }
 0x857   :  { %2811 = vmatprep.mubr.msk.f32.mxu1 %vm658_vm1, %v1653_v12  ;;  %2821 = vmatpush3.msra.mxu1 %v1780_v21 }
 0x858   :  { %2812 = vmatmul.mubr.msk.f32.gmra.mxu1 %vm658_vm1, %v1654_v56 }
 0x910   :  { %v2807_v39 = vpop.f32.mrf.mxu1 }
 0x911   :  { %v1775_v23 = vadd.f32 %v2807_v39, %v3749_v5 }
 0x912   :  { %v1745_v52 = vpop.f32.mrf.mxu1 }
 0x913   :  { %v1774_v31 = vadd.f32 %v1745_v52, %v3752_v6 }
 0x914   :  { %v2810_v19 = vpop.f32.mrf.mxu1 }
 0x915   :  { %2822 = vmatprep.mubr.msk.f32.mxu1 %vm62_vm0, %v1774_v31  ;;  %v1777_v57 = vadd.f32 %v2810_v19, %v3755_v2 }
 0x916   :  { %v1755_v43 = vpop.f32.mrf.mxu1  ;;  %2823 = vmatmul.mubr.msk.f32.vlgmr.msra.gmra.mxu1 %vm62_vm0, %v1775_v23 }
 0x917   :  { %v1776_v41 = vadd.f32 %v1755_v43, %v3758_v13 }
 0x918   :  { %v2813_v29 = vpop.f32.mrf.mxu1 }
 0x919   :  { %2825 = vmatprep.mubr.msk.f32.mxu1 %vm62_vm0, %v1776_v41  ;;  %v1779_v47 = vadd.f32 %v2813_v29, %v3760_v27  ;;  %v3006_v27 = vld [vmem:[%s4037_s26] sm:$0xff] }
 0x91a   :  { %v1765_v6 = vpop.f32.mrf.mxu1  ;;  %2826 = vmatmul.mubr.msk.f32.gmra.mxu1 %vm62_vm0, %v1777_v57 }
 0x91b   :  { %v1778_v5 = vadd.f32 %v1765_v6, %v1464_v60  ;;  %v2015_v6 = vld [vmem:[%s4028_s13 + $0x18] sm:$0xff] }
 0x91c   :  { %2831 = vmatprep.subr.mxu0 %v2015_v6 }
 0x91d   :  { %2828 = vmatprep.mubr.msk.f32.mxu1 %vm62_vm0, %v1778_v5  ;;  %v2014_v5 = vld [vmem:[%s4028_s13 + $0x10] sm:$0xff]  ;;  %2832 = vmatpush3.msra.mxu0 %v2015_v6 }
 0x91e   :  { %2829 = vmatmul.mubr.msk.f32.gmra.mxu1 %vm62_vm0, %v1779_v47  ;;  %v2013_v47 = vld [vmem:[%s4028_s13 + $0x8] sm:$0xff]  ;;  %2833 = vmatprep.subr.mxu0 %v2014_v5 }
 0x91f   :  { %2834 = vmatpush3.msra.mxu0 %v2014_v5  ;;  %v2189_v5 = vld [vmem:[%s4031_s14 + $0x30] sm:$0xff] }
 0x920   :  { %2835 = vmatprep.subr.mxu0 %v2013_v47 }
 0x921   :  { %2836 = vmatpush3.msra.mxu0 %v2013_v47  ;;  %v2188_v47 = vld [vmem:[%s4031_s14 + $0x28] sm:$0xff] }
 0x9d6   :  { %v2824_v58 = vpop.f32.mrf.mxu1 }
 0x9d7   :  { %v1881_v2 = vadd.f32 %v2824_v58, %v2416_v59 }
 0x9d8   :  { %v1875_v13 = vpop.f32.mrf.mxu1 }
 0x9d9   :  { %v3820_v32 = vadd.f32 %v3005_v4, %v1881_v2  ;;  %v1876_v9 = vadd.f32 %v2416_v59, %v1875_v13 }
 0x9da   :  { %v2827_v33 = vpop.f32.mrf.mxu1 }
 0x9db   :  { %v3825_v0 = vadd.f32 %v3006_v27, %v1876_v9  ;;  %v1891_v1 = vadd.f32 %v2827_v33, %v2416_v59  ;;  %v1913_v63 = vsel %vm62_vm0, %v3820_v32, 0.0 }
 0x9dc   :  { %1914 = vadd.xlane.f32.xlu1 %v1913_v63  ;;  %v1885_v34 = vpop.f32.mrf.mxu1 }
 0x9dd   :  { %v3832_v20 = vadd.f32 %v3007_v3, %v1891_v1  ;;  %v1886_v45 = vadd.f32 %v2416_v59, %v1885_v34  ;;  %v1910_v48 = vsel %vm62_vm0, %v3825_v0, 0.0 }
 0x9de   :  { %1911 = vadd.xlane.f32.xlu0 %v1910_v48  ;;  %v2830_v51 = vpop.f32.mrf.mxu1 }
 0x9df   :  { %v3839_v49 = vadd.f32 %v3008_v14, %v1886_v45  ;;  %v1901_v7 = vadd.f32 %v2830_v51, %v2416_v59  ;;  %v1919_v8 = vsel %vm62_vm0, %v3832_v20, 0.0 }
 0x9e0   :  { %1920 = vadd.xlane.f32.xlu1 %v1919_v8  ;;  %v1895_v15 = vpop.f32.mrf.mxu1 }
 0x9e1   :  { %v3846_v36 = vadd.f32 %v3009_v26, %v1901_v7  ;;  %v1896_v50 = vadd.f32 %v2416_v59, %v1895_v15  ;;  %v1916_v54 = vsel %vm62_vm0, %v3839_v49, 0.0  ;;  %v2012_v59 = vld [vmem:[%s4028_s13] sm:$0xff] }
 0x9e2   :  { %1917 = vadd.xlane.f32.xlu0 %v1916_v54  ;;  %2837 = vmatprep.subr.mxu0 %v2012_v59 }
 0x9e3   :  { %v3853_v16 = vadd.f32 %v3010_v62, %v1896_v50  ;;  %v1925_v24 = vsel %vm62_vm0, %v3846_v36, 0.0  ;;  %2838 = vmatpush3.msra.mxu0 %v2012_v59  ;;  %v1989_v50 = vld [vmem:[%s4029_s11 + $0x8] sm:$0xff]  ;;  %v2187_v59 = vld [vmem:[%s4031_s14 + $0x20] sm:$0xff] }
 0x9e4   :  { %1926 = vadd.xlane.f32.xlu1 %v1925_v24  ;;  %v1988_v24 = vld [vmem:[%s4029_s11] sm:$0xff] }
 0x9e5   :  { %v1922_v35 = vsel %vm62_vm0, %v3853_v16, 0.0 }
 0x9e6   :  { %1923 = vadd.xlane.f32.xlu0 %v1922_v35 }
 0xa65   :  { %v1915_v17 = vpop.xlane.xlu1 %1914 }
 0xa66   :  { %v1929_v10 = vmul.f32 0.03125, %v1915_v17 }
 0xa67   :  { %v1912_v18 = vpop.xlane.xlu0 %1911 }
 0xa68   :  { %v3860_v11 = vsub.f32 %v3820_v32, %v1929_v10  ;;  %v1928_v53 = vmul.f32 0.03125, %v1912_v18  ;;  %v2000_v18 = vld [vmem:[%s4030_s12] sm:$0xff] }
 0xa69   :  { %v1921_v22 = vpop.xlane.xlu1 %1920 }
 0xa6a   :  { %v3863_v25 = vsub.f32 %v3825_v0, %v1928_v53  ;;  %v1931_v55 = vmul.f32 0.03125, %v1921_v22  ;;  %v1941_v37 = vmul.f32 %v3860_v11, %v3860_v11  ;;  %v2001_v22 = vld [vmem:[%s4030_s12 + $0x8] sm:$0xff] }
 0xa6b   :  { %v1918_v46 = vpop.xlane.xlu0 %1917 }
 0xa6c   :  { %v3868_v40 = vsub.f32 %v3832_v20, %v1931_v55  ;;  %v1930_v38 = vmul.f32 0.03125, %v1918_v46  ;;  %v1949_v42 = vsel %vm62_vm0, %v1941_v37, 0.0  ;;  %v1940_v44 = vmul.f32 %v3863_v25, %v3863_v25  ;;  %v1991_v55 = vld [vmem:[%s4029_s11 + $0x18] sm:$0xff] }
 0xa6d   :  { %1950 = vadd.xlane.f32.xlu1 %v1949_v42  ;;  %v1927_v30 = vpop.xlane.xlu1 %1926 }
 0xa6e   :  { %v3874_v61 = vsub.f32 %v3839_v49, %v1930_v38  ;;  %v1933_v12 = vmul.f32 0.03125, %v1927_v30  ;;  %v1946_v56 = vsel %vm62_vm0, %v1940_v44, 0.0  ;;  %v1943_v21 = vmul.f32 %v3868_v40, %v3868_v40  ;;  %v2002_v30 = vld [vmem:[%s4030_s12 + $0x10] sm:$0xff] }
 0xa6f   :  { %1947 = vadd.xlane.f32.xlu0 %v1946_v56  ;;  %v1924_v39 = vpop.xlane.xlu0 %1923  ;;  %v2003_v56 = vld [vmem:[%s4030_s12 + $0x18] sm:$0xff] }
 0xa70   :  { %v3880_v52 = vsub.f32 %v3846_v36, %v1933_v12  ;;  %v1932_v31 = vmul.f32 0.03125, %v1924_v39  ;;  %v1955_v23 = vsel %vm62_vm0, %v1943_v21, 0.0  ;;  %v1942_v19 = vmul.f32 %v3874_v61, %v3874_v61 }
 0xa71   :  { %1956 = vadd.xlane.f32.xlu1 %v1955_v23 }
 0xa72   :  { %v3886_v43 = vsub.f32 %v3853_v16, %v1932_v31  ;;  %v1952_v28 = vsel %vm62_vm0, %v1942_v19, 0.0  ;;  %v1945_v41 = vmul.f32 %v3880_v52, %v3880_v52  ;;  %v1992_v31 = vld [vmem:[%s4029_s11 + $0x20] sm:$0xff] }
 0xa73   :  { %1953 = vadd.xlane.f32.xlu0 %v1952_v28 }
 0xa74   :  { %v1961_v57 = vsel %vm62_vm0, %v1945_v41, 0.0  ;;  %v1944_v29 = vmul.f32 %v3886_v43, %v3886_v43  ;;  %v2004_v41 = vld [vmem:[%s4030_s12 + $0x20] sm:$0xff] }
 0xa75   :  { %1962 = vadd.xlane.f32.xlu1 %v1961_v57 }
 0xa76   :  { %v1958_v60 = vsel %vm62_vm0, %v1944_v29, 0.0  ;;  %v2005_v29 = vld [vmem:[%s4030_s12 + $0x28] sm:$0xff] }
 0xa77   :  { %1959 = vadd.xlane.f32.xlu0 %v1958_v60 }
 0xaf6   :  { %v1951_v58 = vpop.xlane.xlu1 %1950 }
 0xaf7   :  { %v1965_v2 = vmul.f32 0.03125, %v1951_v58  ;;  %v2186_v58 = vld [vmem:[%s4031_s14 + $0x18] sm:$0xff] }
 0xaf8   :  { %v1948_v13 = vpop.xlane.xlu0 %1947 }
 0xaf9   :  { %v1971_v4 = vadd.f32 1e-05, %v1965_v2  ;;  %v1964_v9 = vmul.f32 0.03125, %v1948_v13  ;;  %v2185_v2 = vld [vmem:[%s4031_s14 + $0x10] sm:$0xff]  ;;  %v2184_v13 = vld [vmem:[%s4031_s14 + $0x8] sm:$0xff] }
 0xafa   :  { %v1957_v33 = vpop.xlane.xlu1 %1956 }
 0xafb   :  { %2981 = vrsqrt.f32 %v1971_v4  ;;  %v1970_v27 = vadd.f32 1e-05, %v1964_v9  ;;  %v1967_v1 = vmul.f32 0.03125, %v1957_v33  ;;  %v2183_v4 = vld [vmem:[%s4031_s14] sm:$0xff] }
 0xafc   :  { %v1954_v63 = vpop.xlane.xlu0 %1953 }
 0xafd   :  { %2983 = vrsqrt.f32 %v1970_v27  ;;  %v1973_v34 = vadd.f32 1e-05, %v1967_v1  ;;  %v1966_v3 = vmul.f32 0.03125, %v1954_v63 }
 0xafe   :  { %v1963_v45 = vpop.xlane.xlu1 %1962 }
 0xaff   :  { %2985 = vrsqrt.f32 %v1973_v34  ;;  %v1972_v48 = vadd.f32 1e-05, %v1966_v3  ;;  %v1969_v51 = vmul.f32 0.03125, %v1963_v45 }
 0xb00   :  { %v1960_v14 = vpop.xlane.xlu0 %1959 }
 0xb01   :  { %2987 = vrsqrt.f32 %v1972_v48  ;;  %v1975_v7 = vadd.f32 1e-05, %v1969_v51  ;;  %v1968_v8 = vmul.f32 0.03125, %v1960_v14 }
 0xb03   :  { %2989 = vrsqrt.f32 %v1975_v7  ;;  %v1974_v15 = vadd.f32 1e-05, %v1968_v8 }
 0xb05   :  { %2991 = vrsqrt.f32 %v1974_v15 }
 0xb08   :  { %v2982_v26 = vpop.eup %2981 }
 0xb09   :  { %v1983_v54 = vmul.f32 %v2982_v26, %v3860_v11 }
 0xb0a   :  { %v2984_v62 = vpop.eup %2983 }
 0xb0b   :  { %v1982_v35 = vmul.f32 %v2984_v62, %v3863_v25  ;;  %v1995_v10 = vmul.f32 %v1989_v50, %v1983_v54  ;;  %v1990_v25 = vld [vmem:[%s4029_s11 + $0x10] sm:$0xff] }
 0xb0c   :  { %v2986_v17 = vpop.eup %2985 }
 0xb0d   :  { %v1994_v53 = vmul.f32 %v1988_v24, %v1982_v35  ;;  %v1985_v11 = vmul.f32 %v2986_v17, %v3868_v40  ;;  %v2007_v44 = vadd.f32 %v2001_v22, %v1995_v10 }
 0xb0e   :  { %v2988_v37 = vpop.eup %2987 }
 0xb0f   :  { %v2006_v46 = vadd.f32 %v2000_v18, %v1994_v53  ;;  %v1984_v38 = vmul.f32 %v2988_v37, %v3874_v61  ;;  %v1997_v12 = vmul.f32 %v1991_v55, %v1985_v11  ;;  %v1993_v61 = vld [vmem:[%s4029_s11 + $0x28] sm:$0xff] }
 0xb10   :  { %v2990_v42 = vpop.eup %2989 }
 0xb11   :  { %2839 = vmatprep.mubr.msk.f32.mxu0 %vm62_vm0, %v2006_v46  ;;  %v1996_v40 = vmul.f32 %v1990_v25, %v1984_v38  ;;  %v1987_v21 = vmul.f32 %v2990_v42, %v3880_v52  ;;  %v2009_v28 = vadd.f32 %v2003_v56, %v1997_v12 }
 0xb12   :  { %v2992_v39 = vpop.eup %2991  ;;  %2840 = vmatmul.mubr.msk.f32.vlgmr.msra.gmra.mxu0 %vm62_vm0, %v2007_v44 }
 0xb13   :  { %v2008_v23 = vadd.f32 %v2002_v30, %v1996_v40  ;;  %v1986_v19 = vmul.f32 %v2992_v39, %v3886_v43  ;;  %v1999_v52 = vmul.f32 %v1993_v61, %v1987_v21  ;;  %v2190_v43 = vld [vmem:[%s4031_s14 + $0x38] sm:$0xff] }
 0xb14   :  { %2848 = vmatprep.subr.mxu1 %v2190_v43 }
 0xb15   :  { %2842 = vmatprep.mubr.msk.f32.mxu0 %vm62_vm0, %v2008_v23  ;;  %v1998_v57 = vmul.f32 %v1992_v31, %v1986_v19  ;;  %v2011_v6 = vadd.f32 %v2005_v29, %v1999_v52  ;;  %2849 = vmatpush3.msra.mxu1 %v2190_v43 }
 0xb16   :  { %2843 = vmatmul.mubr.msk.f32.gmra.mxu0 %vm62_vm0, %v2009_v28  ;;  %2850 = vmatprep.subr.mxu1 %v2189_v5 }
 0xb17   :  { %v2010_v60 = vadd.f32 %v2004_v41, %v1998_v57  ;;  %2851 = vmatpush3.msra.mxu1 %v2189_v5 }
 0xb18   :  { %2852 = vmatprep.subr.mxu1 %v2188_v47 }
 0xb19   :  { %2845 = vmatprep.mubr.msk.f32.mxu0 %vm62_vm0, %v2010_v60  ;;  %2853 = vmatpush3.msra.mxu1 %v2188_v47 }
 0xb1a   :  { %2846 = vmatmul.mubr.msk.f32.gmra.mxu0 %vm62_vm0, %v2011_v6  ;;  %2854 = vmatprep.subr.mxu1 %v2187_v59 }
 0xb1b   :  { %2855 = vmatpush3.msra.mxu1 %v2187_v59 }
 0xb1c   :  { %2856 = vmatprep.subr.mxu1 %v2186_v58 }
 0xb1d   :  { %2857 = vmatpush3.msra.mxu1 %v2186_v58 }
 0xb1e   :  { %2858 = vmatprep.subr.mxu1 %v2185_v2 }
 0xb1f   :  { %2859 = vmatpush3.msra.mxu1 %v2185_v2 }
 0xb20   :  { %2860 = vmatprep.subr.mxu1 %v2184_v13 }
 0xb21   :  { %2861 = vmatpush3.msra.mxu1 %v2184_v13 }
 0xb22   :  { %2862 = vmatprep.subr.mxu1 %v2183_v4 }
 0xb23   :  { %2863 = vmatpush3.msra.mxu1 %v2183_v4 }
 0xbd2   :  { %v2841_v9 = vpop.f32.mrf.mxu0 }
 0xbd3   :  { %v2130_v33 = vmul.f32 %v2841_v9, %v2841_v9 }
 0xbd4   :  { %v2100_v27 = vpop.f32.mrf.mxu0 }
 0xbd5   :  { %v2136_v1 = vmul.f32 %v2841_v9, %v2130_v33  ;;  %v2129_v63 = vmul.f32 %v2100_v27, %v2100_v27 }
 0xbd6   :  { %v2844_v34 = vpop.f32.mrf.mxu0 }
 0xbd7   :  { %v2142_v3 = vmul.f32 0.044715, %v2136_v1  ;;  %v2135_v45 = vmul.f32 %v2129_v63, %v2100_v27  ;;  %v2132_v48 = vmul.f32 %v2844_v34, %v2844_v34 }
 0xbd8   :  { %v2110_v51 = vpop.f32.mrf.mxu0 }
 0xbd9   :  { %v2148_v14 = vadd.f32 %v2841_v9, %v2142_v3  ;;  %v2141_v7 = vmul.f32 0.044715, %v2135_v45  ;;  %v2138_v8 = vmul.f32 %v2844_v34, %v2132_v48  ;;  %v2131_v15 = vmul.f32 %v2110_v51, %v2110_v51 }
 0xbda   :  { %v2847_v26 = vpop.f32.mrf.mxu0 }
 0xbdb   :  { %v2154_v50 = vmul.f32 0.7978846, %v2148_v14  ;;  %v2147_v54 = vadd.f32 %v2141_v7, %v2100_v27  ;;  %v2144_v62 = vmul.f32 0.044715, %v2138_v8  ;;  %v2137_v24 = vmul.f32 %v2131_v15, %v2110_v51 }
 0xbdc   :  { %v2134_v35 = vmul.f32 %v2847_v26, %v2847_v26  ;;  %v2120_v17 = vpop.f32.mrf.mxu0 }
 0xbdd   :  { %2993 = vtanh.f32 %v2154_v50  ;;  %v2153_v10 = vmul.f32 0.7978846, %v2147_v54  ;;  %v2150_v18 = vadd.f32 %v2844_v34, %v2144_v62  ;;  %v2143_v53 = vmul.f32 0.044715, %v2137_v24 }
 0xbde   :  { %v2140_v22 = vmul.f32 %v2847_v26, %v2134_v35  ;;  %v2133_v11 = vmul.f32 %v2120_v17, %v2120_v17 }
 0xbdf   :  { %2995 = vtanh.f32 %v2153_v10  ;;  %v2156_v55 = vmul.f32 0.7978846, %v2150_v18  ;;  %v2149_v37 = vadd.f32 %v2143_v53, %v2110_v51 }
 0xbe0   :  { %v2146_v25 = vmul.f32 0.044715, %v2140_v22  ;;  %v2139_v46 = vmul.f32 %v2133_v11, %v2120_v17 }
 0xbe1   :  { %2997 = vtanh.f32 %v2156_v55  ;;  %v2155_v38 = vmul.f32 0.7978846, %v2149_v37 }
 0xbe2   :  { %v2152_v42 = vadd.f32 %v2847_v26, %v2146_v25  ;;  %v2145_v44 = vmul.f32 0.044715, %v2139_v46 }
 0xbe3   :  { %2999 = vtanh.f32 %v2155_v38 }
 0xbe4   :  { %v2158_v30 = vmul.f32 0.7978846, %v2152_v42  ;;  %v2151_v12 = vadd.f32 %v2145_v44, %v2120_v17 }
 0xbe6   :  { %3001 = vtanh.f32 %v2158_v30  ;;  %v2157_v40 = vmul.f32 0.7978846, %v2151_v12 }
 0xbe8   :  { %3003 = vtanh.f32 %v2157_v40 }
 0xbea   :  { %v2994_v56 = vpop.eup %2993 }
 0xbeb   :  { %v2166_v21 = vadd.f32 1.0, %v2994_v56 }
 0xbec   :  { %v2996_v61 = vpop.eup %2995 }
 0xbed   :  { %v2165_v39 = vadd.f32 1.0, %v2996_v61  ;;  %v2172_v23 = vmul.f32 0.5, %v2166_v21 }
 0xbee   :  { %v2998_v31 = vpop.eup %2997 }
 0xbef   :  { %v2171_v19 = vmul.f32 0.5, %v2165_v39  ;;  %v2168_v28 = vadd.f32 1.0, %v2998_v31  ;;  %v2178_v29 = vmul.f32 %v2841_v9, %v2172_v23 }
 0xbf0   :  { %v3000_v41 = vpop.eup %2999 }
 0xbf1   :  { %v2177_v52 = vmul.f32 %v2171_v19, %v2100_v27  ;;  %v2167_v57 = vadd.f32 1.0, %v3000_v41  ;;  %v2174_v60 = vmul.f32 0.5, %v2168_v28 }
 0xbf3   :  { %v3002_v6 = vpop.eup %3001  ;;  %v2173_v43 = vmul.f32 0.5, %v2167_v57  ;;  %2864 = vmatprep.mubr.msk.f32.mxu1 %vm2191_vm2, %v2177_v52  ;;  %v2180_v58 = vmul.f32 %v2844_v34, %v2174_v60 }
 0xbf4   :  { %v2170_v5 = vadd.f32 1.0, %v3002_v6  ;;  %2865 = vmatmul.mubr.msk.f32.vlgmr.msra.gmra.mxu1 %vm2191_vm2, %v2178_v29 }
 0xbf5   :  { %v3004_v47 = vpop.eup %3003  ;;  %v2179_v59 = vmul.f32 %v2173_v43, %v2110_v51 }
 0xbf6   :  { %v2169_v2 = vadd.f32 1.0, %v3004_v47  ;;  %v2176_v13 = vmul.f32 0.5, %v2170_v5 }
 0xbf7   :  { %2867 = vmatprep.mubr.msk.f32.mxu1 %vm2191_vm2, %v2179_v59 }
 0xbf8   :  { %v2175_v4 = vmul.f32 0.5, %v2169_v2  ;;  %2868 = vmatmul.mubr.msk.f32.gmra.mxu1 %vm2191_vm2, %v2180_v58  ;;  %v2182_v9 = vmul.f32 %v2847_v26, %v2176_v13 }
 0xbfa   :  { %v2181_v33 = vmul.f32 %v2175_v4, %v2120_v17 }
 0xbfc   :  { %2870 = vmatprep.mubr.msk.f32.mxu1 %vm2191_vm2, %v2181_v33 }
 0xbfd   :  { %2871 = vmatmul.mubr.msk.f32.gmra.mxu1 %vm2191_vm2, %v2182_v9 }
 0xcb4   :  { %v2866_v27 = vpop.f32.mrf.mxu1 }
 0xcb5   :  { %v2306_v1 = vadd.f32 %v2866_v27, %v3820_v32 }
 0xcb6   :  { %v2276_v63 = vpop.f32.mrf.mxu1 }
 0xcb7   :  { %2312 = vst.msk [vmem:[%s4032_s17 + $0x8] sm:$0xff] %vm62_vm0, %v2306_v1  ;;  %v2305_v34 = vadd.f32 %v2276_v63, %v3825_v0 }
 0xcb8   :  { %v2869_v3 = vpop.f32.mrf.mxu1 }
 0xcb9   :  { %2311 = vst.msk [vmem:[%s4032_s17] sm:$0xff] %vm62_vm0, %v2305_v34  ;;  %v2308_v45 = vadd.f32 %v2869_v3, %v3832_v20 }
 0xcba   :  { %v2286_v48 = vpop.f32.mrf.mxu1 }
 0xcbb   :  { %2314 = vst.msk [vmem:[%s4032_s17 + $0x18] sm:$0xff] %vm62_vm0, %v2308_v45  ;;  %v2307_v32 = vadd.f32 %v2286_v48, %v3839_v49 }
 0xcbd   :  { %2313 = vst.msk [vmem:[%s4032_s17 + $0x10] sm:$0xff] %vm62_vm0, %v2307_v32  ;;  %v2872_v0 = vpop.f32.mrf.mxu1 }
 0xcbe   :  { %v2310_v51 = vadd.f32 %v2872_v0, %v3846_v36 }
 0xcbf   :  { %v2296_v14 = vpop.f32.mrf.mxu1 }
 0xcc0   :  { %2316 = vst.msk [vmem:[%s4032_s17 + $0x28] sm:$0xff] %vm62_vm0, %v2310_v51  ;;  %v2309_v20 = vadd.f32 %v2296_v14, %v3853_v16 }
 0xcc2   :  { %2315 = vst.msk [vmem:[%s4032_s17 + $0x20] sm:$0xff] %vm62_vm0, %v2309_v20 }

</bundles_post_ra>
